<compile_context>
chip_gen: v6e
topology: v6e:2x2x1
jax: 0.10.0
libtpu: 0.0.40
codegen_flags: <defaults>
</compile_context>

<pallas_src>
import functools
import math

import jax
import jax.numpy as jnp
from jax import lax
from jax.experimental import pallas as pl
from jax.experimental.pallas import tpu as pltpu

KERNEL_SIZE = 4          # S3IM default
STRIDE = 4               # S3IM default
REPEAT_TIME = 10         # S3IM default
# S3IM's bundled SSIM uses padding = (window_size - 1) // 2 in its conv2d.
PAD = (KERNEL_SIZE - 1) // 2
TAPS = KERNEL_SIZE * KERNEL_SIZE
C1 = 0.01 ** 2
C2 = 0.03 ** 2

LANES = 128
SUBLANES = 8
STRIP = 32               # rows per inner strip: 4 accumulators x 4 vregs each
MAX_TILE_ROWS = 512      # 16 taps * 512 * 128 * 4 B = 4 MiB per input per buffer


def _gaussian_window_flat(window_size: int, sigma: float):
    """Same Gaussian window as pytorch-ssim's create_window (sigma=1.5)."""
    g = [math.exp(-((x - window_size // 2) ** 2) / (2.0 * sigma ** 2))
         for x in range(window_size)]
    s = sum(g)
    g = [v / s for v in g]
    # 2D window = outer(g, g); flattened row-major so tap k = kh*ws + kw.
    return [g[i] * g[j] for i in range(window_size) for j in range(window_size)]


W_FLAT = _gaussian_window_flat(KERNEL_SIZE, 1.5)


def _round_up(x: int, m: int) -> int:
    return -(-x // m) * m


def _ssim_kernel(x_ref, y_ref, o_ref, *, tile_rows):
    """One grid step = one lane-dense slab of the flattened spatial axis.

    x_ref / y_ref block: (16, tile_rows, 128)  -- 16 = taps of the 4x4 window
    o_ref block:         (1, 8, 128)           -- per-block partial SSIM sums
    """
    num_strips = tile_rows // STRIP

    def strip_body(s, acc):
        r0 = pl.multiple_of(s * STRIP, STRIP)

        mu1 = mu2 = ex2y2 = exy = None
        # 16 taps unrolled; each tap plane strip is loaded exactly once and
        # FMA'd into four strip-sized running statistics.
        for k in range(TAPS):
            w = W_FLAT[k]
            xk = x_ref[k, pl.ds(r0, STRIP), :].astype(jnp.float32)
            yk = y_ref[k, pl.ds(r0, STRIP), :].astype(jnp.float32)
            wx = w * xk
            wy = w * yk
            if k == 0:
                mu1, mu2 = wx, wy
                ex2y2 = xk * wx + yk * wy
                exy = yk * wx
            else:
                mu1 = mu1 + wx
                mu2 = mu2 + wy
                ex2y2 = ex2y2 + (xk * wx + yk * wy)
                exy = exy + yk * wx

        mu1_sq = mu1 * mu1
        mu2_sq = mu2 * mu2
        mu12 = mu1 * mu2
        mu_sq_sum = mu1_sq + mu2_sq
        sigma12 = exy - mu12
        sigma_sq_sum = ex2y2 - mu_sq_sum
        num = (2.0 * mu12 + C1) * (2.0 * sigma12 + C2)
        den = (mu_sq_sum + C1) * (sigma_sq_sum + C2)
        # Exact division (matches the PyTorch reference).  An all-zero padded
        # column yields num == den bit-for-bit, so its SSIM is 1.0 and the
        # padded-tail contribution is subtracted statically in JAX.
        ssim = num / den

        # Fold (STRIP, 128) -> (8, 128) and add into the persistent carry.
        part = ssim[0:SUBLANES, :]
        for r in range(SUBLANES, STRIP, SUBLANES):
            part = part + ssim[r:r + SUBLANES, :]
        return acc + part

    acc = lax.fori_loop(0, num_strips, strip_body,
                        jnp.zeros((SUBLANES, LANES), jnp.float32))
    o_ref[0] = acc


def _ssim_partial_sums(x_taps, y_taps, tile_rows, num_blocks):
    """x_taps / y_taps: (16, total_rows, 128). Returns (num_blocks, 8, 128)."""
    taps, total_rows, lanes = x_taps.shape
    kernel = functools.partial(_ssim_kernel, tile_rows=tile_rows)
    return pl.pallas_call(
        kernel,
        out_shape=jax.ShapeDtypeStruct((num_blocks, SUBLANES, LANES), jnp.float32),
        grid_spec=pltpu.PrefetchScalarGridSpec(
            num_scalar_prefetch=0,
            grid=(num_blocks,),
            in_specs=[
                pl.BlockSpec((taps, tile_rows, lanes), lambda i: (0, i, 0)),
                pl.BlockSpec((taps, tile_rows, lanes), lambda i: (0, i, 0)),
            ],
            out_specs=pl.BlockSpec((1, SUBLANES, LANES), lambda i: (i, 0, 0)),
        ),
        compiler_params=pltpu.CompilerParams(
            dimension_semantics=("parallel",),     # lets v7x split blocks across TCs
            vmem_limit_bytes=40 * 1024 * 1024,     # > v5e's 16 MiB scoped default
        ),
    )(x_taps, y_taps)


def s3im_loss(src_vec, tar_vec, patch_size, *, repeat_time=REPEAT_TIME,
              shuffle_key=None, tap_dtype=jnp.float32):
    """S3IM.forward: src_vec, tar_vec are (B, R, C); patch_size=(ph, pw), R == ph*pw."""
    B, R, Cch = src_vec.shape
    ph, pw = patch_size
    assert R == ph * pw, "patch_size must satisfy R == ph * pw"

    # Virtual-patch shuffle: first block identity, remaining blocks random perms.
    # TODO(synk): torch.randperm uses torch's global RNG stream; reproduced here
    # deterministically with a fixed JAX key.
    if shuffle_key is None:
        shuffle_key = jax.random.PRNGKey(42)
    idx_list = [jnp.arange(R)]
    key = shuffle_key
    for _ in range(1, repeat_time):
        key, sub = jax.random.split(key)
        idx_list.append(jax.random.permutation(sub, R))
    res_index = jnp.concatenate(idx_list)                      # (R * repeat_time,)

    H, W = ph, pw * repeat_time                                # virtual patch H x W
    Ho = (H + 2 * PAD - KERNEL_SIZE) // STRIDE + 1
    Wo = (W + 2 * PAD - KERNEL_SIZE) // STRIDE + 1
    K = KERNEL_SIZE

    # Per-tap row indices into the (R+1)-row source; row R is the appended zero
    # row implementing the conv's zero padding.  Fuses the res_index shuffle,
    # the NCHW reshape, the zero padding and the 4x4 space-to-depth into one
    # small index table (int32; fine for realistic S3IM sizes << 2^31).
    kh = jnp.arange(K).reshape(K, 1, 1, 1)
    kw = jnp.arange(K).reshape(1, K, 1, 1)
    ho = jnp.arange(Ho).reshape(1, 1, Ho, 1)
    wo = jnp.arange(Wo).reshape(1, 1, 1, Wo)
    h = ho * STRIDE + kh - PAD                                 # (K,1,Ho,1)
    w = wo * STRIDE + kw - PAD                                 # (1,K,1,Wo)
    valid = (h >= 0) & (h < H) & (w >= 0) & (w < W)            # (K,K,Ho,Wo)
    j = jnp.clip(h, 0, H - 1) * W + jnp.clip(w, 0, W - 1)      # flat idx in virtual patch
    r_idx = jnp.where(valid, res_index[j], R)                  # (K,K,Ho,Wo) in [0, R]
    r_idx = r_idx.reshape(TAPS, Ho, Wo)

    # Lane-dense tiling of the flattened (Ho, Wo, B, C) output axis.
    n_valid = B * Cch * Ho * Wo
    rows = -(-n_valid // LANES)
    rows_padded = _round_up(max(rows, 1), STRIP)
    if rows_padded <= STRIP:
        num_blocks = 1
    else:
        # >= 2 blocks so both v7x TensorCores get work; <= MAX_TILE_ROWS each.
        num_blocks = max(2, -(-rows_padded // MAX_TILE_ROWS))
    tile_rows = _round_up(-(-rows_padded // num_blocks), STRIP)
    total_rows = tile_rows * num_blocks
    n_cols = total_rows * LANES

    def to_taps(vec):
        # Small source transpose (B,R,C) -> (R, B*C) + zero row, then a single
        # contiguous-row gather that lands directly in tap-major, lane-dense
        # order (no full-size mask multiply, no materialized 6-D transpose).
        v = jnp.transpose(vec, (1, 0, 2)).reshape(R, B * Cch).astype(tap_dtype)
        v = jnp.concatenate([v, jnp.zeros((1, B * Cch), tap_dtype)], axis=0)
        g = jnp.take(v, r_idx, axis=0)                         # (16, Ho, Wo, B*C)
        flat = g.reshape(TAPS, n_valid)
        flat = jnp.pad(flat, ((0, 0), (0, n_cols - n_valid)))  # zero tail columns
        return flat.reshape(TAPS, total_rows, LANES)

    x_taps = to_taps(src_vec)
    y_taps = to_taps(tar_vec)

    partials = _ssim_partial_sums(x_taps, y_taps, tile_rows, num_blocks)

    # Each zero-padded tail column contributes exactly 1.0; subtract the
    # statically known count and take the size_average mean over valid elems.
    n_pad = n_cols - n_valid
    mean_ssim = (jnp.sum(partials) - jnp.float32(n_pad)) / jnp.float32(n_valid)
    return 1.0 - mean_ssim


if __name__ == "__main__":
    key = jax.random.PRNGKey(0)
    B, ph, pw = 2, 8, 8          # small shapes: R = 64, virtual patch = 8 x 80
    R = ph * pw
    k1, k2 = jax.random.split(key)
    src = jax.random.uniform(k1, (B, R, 3), dtype=jnp.float32)
    tar = jax.random.uniform(k2, (B, R, 3), dtype=jnp.float32)

    loss_fn = jax.jit(functools.partial(s3im_loss, patch_size=(ph, pw)))
    loss = loss_fn(src, tar)
    jax.block_until_ready(loss)
    print("KERNEL_OK")
</pallas_src>

<mosaic_0001>
module attributes {stable_mosaic.version = 11 : i64} {
  func.func @_ssim_kernel(%arg0: i32, %arg1: memref<16x32x128xf32, #tpu.memory_space<vmem>>, %arg2: memref<16x32x128xf32, #tpu.memory_space<vmem>>, %arg3: memref<1x8x128xf32, #tpu.memory_space<vmem>>) attributes {dimension_semantics = [#tpu.dimension_semantics<parallel>], iteration_bounds = array<i64: 1>, scalar_prefetch = 0 : i64, scratch_operands = 0 : i64, tpu.core_type = #tpu.core_type<tc>, window_params = [{transform_indices = @transform_0, window_bounds = array<i64: 16, 32, 128>}, {transform_indices = @transform_1, window_bounds = array<i64: 16, 32, 128>}, {transform_indices = @transform_2, window_bounds = array<i64: 1, 8, 128>}]} {
    %cst = arith.constant 0.000000e+00 : f32
    %0 = vector.broadcast %cst : f32 to vector<8x128xf32>
    %c0_i32 = arith.constant 0 : i32
    %c32_i32 = arith.constant 32 : i32
    %1 = arith.muli %c0_i32, %c32_i32 : i32
    %2 = tpu.assume_multiple %1, 32 : i32
    %c0 = arith.constant 0 : index
    %3 = arith.index_cast %2 : i32 to index
    %c0_0 = arith.constant 0 : index
    %4 = vector.load %arg1[%c0, %3, %c0_0] : memref<16x32x128xf32, #tpu.memory_space<vmem>>, vector<1x32x128xf32>
    %5 = vector.shape_cast %4 : vector<1x32x128xf32> to vector<32x128xf32>
    %c0_1 = arith.constant 0 : index
    %6 = arith.index_cast %2 : i32 to index
    %c0_2 = arith.constant 0 : index
    %7 = vector.load %arg2[%c0_1, %6, %c0_2] : memref<16x32x128xf32, #tpu.memory_space<vmem>>, vector<1x32x128xf32>
    %8 = vector.shape_cast %7 : vector<1x32x128xf32> to vector<32x128xf32>
    %cst_3 = arith.constant 0.0186226591 : f32
    %9 = vector.broadcast %cst_3 : f32 to vector<32x128xf32>
    %10 = arith.mulf %9, %5 : vector<32x128xf32>
    %cst_4 = arith.constant 0.0186226591 : f32
    %11 = vector.broadcast %cst_4 : f32 to vector<32x128xf32>
    %12 = arith.mulf %11, %8 : vector<32x128xf32>
    %13 = arith.mulf %5, %10 : vector<32x128xf32>
    %14 = arith.mulf %8, %12 : vector<32x128xf32>
    %15 = arith.addf %13, %14 : vector<32x128xf32>
    %16 = arith.mulf %8, %10 : vector<32x128xf32>
    %c1 = arith.constant 1 : index
    %17 = arith.index_cast %2 : i32 to index
    %c0_5 = arith.constant 0 : index
    %18 = vector.load %arg1[%c1, %17, %c0_5] : memref<16x32x128xf32, #tpu.memory_space<vmem>>, vector<1x32x128xf32>
    %19 = vector.shape_cast %18 : vector<1x32x128xf32> to vector<32x128xf32>
    %c1_6 = arith.constant 1 : index
    %20 = arith.index_cast %2 : i32 to index
    %c0_7 = arith.constant 0 : index
    %21 = vector.load %arg2[%c1_6, %20, %c0_7] : memref<16x32x128xf32, #tpu.memory_space<vmem>>, vector<1x32x128xf32>
    %22 = vector.shape_cast %21 : vector<1x32x128xf32> to vector<32x128xf32>
    %cst_8 = arith.constant 0.0362719856 : f32
    %23 = vector.broadcast %cst_8 : f32 to vector<32x128xf32>
    %24 = arith.mulf %23, %19 : vector<32x128xf32>
    %cst_9 = arith.constant 0.0362719856 : f32
    %25 = vector.broadcast %cst_9 : f32 to vector<32x128xf32>
    %26 = arith.mulf %25, %22 : vector<32x128xf32>
    %27 = arith.addf %10, %24 : vector<32x128xf32>
    %28 = arith.addf %12, %26 : vector<32x128xf32>
    %29 = arith.mulf %19, %24 : vector<32x128xf32>
    %30 = arith.mulf %22, %26 : vector<32x128xf32>
    %31 = arith.addf %29, %30 : vector<32x128xf32>
    %32 = arith.addf %15, %31 : vector<32x128xf32>
    %33 = arith.mulf %22, %24 : vector<32x128xf32>
    %34 = arith.addf %16, %33 : vector<32x128xf32>
    %c2 = arith.constant 2 : index
    %35 = arith.index_cast %2 : i32 to index
    %c0_10 = arith.constant 0 : index
    %36 = vector.load %arg1[%c2, %35, %c0_10] : memref<16x32x128xf32, #tpu.memory_space<vmem>>, vector<1x32x128xf32>
    %37 = vector.shape_cast %36 : vector<1x32x128xf32> to vector<32x128xf32>
    %c2_11 = arith.constant 2 : index
    %38 = arith.index_cast %2 : i32 to index
    %c0_12 = arith.constant 0 : index
    %39 = vector.load %arg2[%c2_11, %38, %c0_12] : memref<16x32x128xf32, #tpu.memory_space<vmem>>, vector<1x32x128xf32>
    %40 = vector.shape_cast %39 : vector<1x32x128xf32> to vector<32x128xf32>
    %cst_13 = arith.constant 0.0452982299 : f32
    %41 = vector.broadcast %cst_13 : f32 to vector<32x128xf32>
    %42 = arith.mulf %41, %37 : vector<32x128xf32>
    %cst_14 = arith.constant 0.0452982299 : f32
    %43 = vector.broadcast %cst_14 : f32 to vector<32x128xf32>
    %44 = arith.mulf %43, %40 : vector<32x128xf32>
    %45 = arith.addf %27, %42 : vector<32x128xf32>
    %46 = arith.addf %28, %44 : vector<32x128xf32>
    %47 = arith.mulf %37, %42 : vector<32x128xf32>
    %48 = arith.mulf %40, %44 : vector<32x128xf32>
    %49 = arith.addf %47, %48 : vector<32x128xf32>
    %50 = arith.addf %32, %49 : vector<32x128xf32>
    %51 = arith.mulf %40, %42 : vector<32x128xf32>
    %52 = arith.addf %34, %51 : vector<32x128xf32>
    %c3 = arith.constant 3 : index
    %53 = arith.index_cast %2 : i32 to index
    %c0_15 = arith.constant 0 : index
    %54 = vector.load %arg1[%c3, %53, %c0_15] : memref<16x32x128xf32, #tpu.memory_space<vmem>>, vector<1x32x128xf32>
    %55 = vector.shape_cast %54 : vector<1x32x128xf32> to vector<32x128xf32>
    %c3_16 = arith.constant 3 : index
    %56 = arith.index_cast %2 : i32 to index
    %c0_17 = arith.constant 0 : index
    %57 = vector.load %arg2[%c3_16, %56, %c0_17] : memref<16x32x128xf32, #tpu.memory_space<vmem>>, vector<1x32x128xf32>
    %58 = vector.shape_cast %57 : vector<1x32x128xf32> to vector<32x128xf32>
    %cst_18 = arith.constant 0.0362719856 : f32
    %59 = vector.broadcast %cst_18 : f32 to vector<32x128xf32>
    %60 = arith.mulf %59, %55 : vector<32x128xf32>
    %cst_19 = arith.constant 0.0362719856 : f32
    %61 = vector.broadcast %cst_19 : f32 to vector<32x128xf32>
    %62 = arith.mulf %61, %58 : vector<32x128xf32>
    %63 = arith.addf %45, %60 : vector<32x128xf32>
    %64 = arith.addf %46, %62 : vector<32x128xf32>
    %65 = arith.mulf %55, %60 : vector<32x128xf32>
    %66 = arith.mulf %58, %62 : vector<32x128xf32>
    %67 = arith.addf %65, %66 : vector<32x128xf32>
    %68 = arith.addf %50, %67 : vector<32x128xf32>
    %69 = arith.mulf %58, %60 : vector<32x128xf32>
    %70 = arith.addf %52, %69 : vector<32x128xf32>
    %c4 = arith.constant 4 : index
    %71 = arith.index_cast %2 : i32 to index
    %c0_20 = arith.constant 0 : index
    %72 = vector.load %arg1[%c4, %71, %c0_20] : memref<16x32x128xf32, #tpu.memory_space<vmem>>, vector<1x32x128xf32>
    %73 = vector.shape_cast %72 : vector<1x32x128xf32> to vector<32x128xf32>
    %c4_21 = arith.constant 4 : index
    %74 = arith.index_cast %2 : i32 to index
    %c0_22 = arith.constant 0 : index
    %75 = vector.load %arg2[%c4_21, %74, %c0_22] : memref<16x32x128xf32, #tpu.memory_space<vmem>>, vector<1x32x128xf32>
    %76 = vector.shape_cast %75 : vector<1x32x128xf32> to vector<32x128xf32>
    %cst_23 = arith.constant 0.0362719856 : f32
    %77 = vector.broadcast %cst_23 : f32 to vector<32x128xf32>
    %78 = arith.mulf %77, %73 : vector<32x128xf32>
    %cst_24 = arith.constant 0.0362719856 : f32
    %79 = vector.broadcast %cst_24 : f32 to vector<32x128xf32>
    %80 = arith.mulf %79, %76 : vector<32x128xf32>
    %81 = arith.addf %63, %78 : vector<32x128xf32>
    %82 = arith.addf %64, %80 : vector<32x128xf32>
    %83 = arith.mulf %73, %78 : vector<32x128xf32>
    %84 = arith.mulf %76, %80 : vector<32x128xf32>
    %85 = arith.addf %83, %84 : vector<32x128xf32>
    %86 = arith.addf %68, %85 : vector<32x128xf32>
    %87 = arith.mulf %76, %78 : vector<32x128xf32>
    %88 = arith.addf %70, %87 : vector<32x128xf32>
    %c5 = arith.constant 5 : index
    %89 = arith.index_cast %2 : i32 to index
    %c0_25 = arith.constant 0 : index
    %90 = vector.load %arg1[%c5, %89, %c0_25] : memref<16x32x128xf32, #tpu.memory_space<vmem>>, vector<1x32x128xf32>
    %91 = vector.shape_cast %90 : vector<1x32x128xf32> to vector<32x128xf32>
    %c5_26 = arith.constant 5 : index
    %92 = arith.index_cast %2 : i32 to index
    %c0_27 = arith.constant 0 : index
    %93 = vector.load %arg2[%c5_26, %92, %c0_27] : memref<16x32x128xf32, #tpu.memory_space<vmem>>, vector<1x32x128xf32>
    %94 = vector.shape_cast %93 : vector<1x32x128xf32> to vector<32x128xf32>
    %cst_28 = arith.constant 0.0706481859 : f32
    %95 = vector.broadcast %cst_28 : f32 to vector<32x128xf32>
    %96 = arith.mulf %95, %91 : vector<32x128xf32>
    %cst_29 = arith.constant 0.0706481859 : f32
    %97 = vector.broadcast %cst_29 : f32 to vector<32x128xf32>
    %98 = arith.mulf %97, %94 : vector<32x128xf32>
    %99 = arith.addf %81, %96 : vector<32x128xf32>
    %100 = arith.addf %82, %98 : vector<32x128xf32>
    %101 = arith.mulf %91, %96 : vector<32x128xf32>
    %102 = arith.mulf %94, %98 : vector<32x128xf32>
    %103 = arith.addf %101, %102 : vector<32x128xf32>
    %104 = arith.addf %86, %103 : vector<32x128xf32>
    %105 = arith.mulf %94, %96 : vector<32x128xf32>
    %106 = arith.addf %88, %105 : vector<32x128xf32>
    %c6 = arith.constant 6 : index
    %107 = arith.index_cast %2 : i32 to index
    %c0_30 = arith.constant 0 : index
    %108 = vector.load %arg1[%c6, %107, %c0_30] : memref<16x32x128xf32, #tpu.memory_space<vmem>>, vector<1x32x128xf32>
    %109 = vector.shape_cast %108 : vector<1x32x128xf32> to vector<32x128xf32>
    %c6_31 = arith.constant 6 : index
    %110 = arith.index_cast %2 : i32 to index
    %c0_32 = arith.constant 0 : index
    %111 = vector.load %arg2[%c6_31, %110, %c0_32] : memref<16x32x128xf32, #tpu.memory_space<vmem>>, vector<1x32x128xf32>
    %112 = vector.shape_cast %111 : vector<1x32x128xf32> to vector<32x128xf32>
    %cst_33 = arith.constant 8.822890e-02 : f32
    %113 = vector.broadcast %cst_33 : f32 to vector<32x128xf32>
    %114 = arith.mulf %113, %109 : vector<32x128xf32>
    %cst_34 = arith.constant 8.822890e-02 : f32
    %115 = vector.broadcast %cst_34 : f32 to vector<32x128xf32>
    %116 = arith.mulf %115, %112 : vector<32x128xf32>
    %117 = arith.addf %99, %114 : vector<32x128xf32>
    %118 = arith.addf %100, %116 : vector<32x128xf32>
    %119 = arith.mulf %109, %114 : vector<32x128xf32>
    %120 = arith.mulf %112, %116 : vector<32x128xf32>
    %121 = arith.addf %119, %120 : vector<32x128xf32>
    %122 = arith.addf %104, %121 : vector<32x128xf32>
    %123 = arith.mulf %112, %114 : vector<32x128xf32>
    %124 = arith.addf %106, %123 : vector<32x128xf32>
    %c7 = arith.constant 7 : index
    %125 = arith.index_cast %2 : i32 to index
    %c0_35 = arith.constant 0 : index
    %126 = vector.load %arg1[%c7, %125, %c0_35] : memref<16x32x128xf32, #tpu.memory_space<vmem>>, vector<1x32x128xf32>
    %127 = vector.shape_cast %126 : vector<1x32x128xf32> to vector<32x128xf32>
    %c7_36 = arith.constant 7 : index
    %128 = arith.index_cast %2 : i32 to index
    %c0_37 = arith.constant 0 : index
    %129 = vector.load %arg2[%c7_36, %128, %c0_37] : memref<16x32x128xf32, #tpu.memory_space<vmem>>, vector<1x32x128xf32>
    %130 = vector.shape_cast %129 : vector<1x32x128xf32> to vector<32x128xf32>
    %cst_38 = arith.constant 0.0706481859 : f32
    %131 = vector.broadcast %cst_38 : f32 to vector<32x128xf32>
    %132 = arith.mulf %131, %127 : vector<32x128xf32>
    %cst_39 = arith.constant 0.0706481859 : f32
    %133 = vector.broadcast %cst_39 : f32 to vector<32x128xf32>
    %134 = arith.mulf %133, %130 : vector<32x128xf32>
    %135 = arith.addf %117, %132 : vector<32x128xf32>
    %136 = arith.addf %118, %134 : vector<32x128xf32>
    %137 = arith.mulf %127, %132 : vector<32x128xf32>
    %138 = arith.mulf %130, %134 : vector<32x128xf32>
    %139 = arith.addf %137, %138 : vector<32x128xf32>
    %140 = arith.addf %122, %139 : vector<32x128xf32>
    %141 = arith.mulf %130, %132 : vector<32x128xf32>
    %142 = arith.addf %124, %141 : vector<32x128xf32>
    %c8 = arith.constant 8 : index
    %143 = arith.index_cast %2 : i32 to index
    %c0_40 = arith.constant 0 : index
    %144 = vector.load %arg1[%c8, %143, %c0_40] : memref<16x32x128xf32, #tpu.memory_space<vmem>>, vector<1x32x128xf32>
    %145 = vector.shape_cast %144 : vector<1x32x128xf32> to vector<32x128xf32>
    %c8_41 = arith.constant 8 : index
    %146 = arith.index_cast %2 : i32 to index
    %c0_42 = arith.constant 0 : index
    %147 = vector.load %arg2[%c8_41, %146, %c0_42] : memref<16x32x128xf32, #tpu.memory_space<vmem>>, vector<1x32x128xf32>
    %148 = vector.shape_cast %147 : vector<1x32x128xf32> to vector<32x128xf32>
    %cst_43 = arith.constant 0.0452982299 : f32
    %149 = vector.broadcast %cst_43 : f32 to vector<32x128xf32>
    %150 = arith.mulf %149, %145 : vector<32x128xf32>
    %cst_44 = arith.constant 0.0452982299 : f32
    %151 = vector.broadcast %cst_44 : f32 to vector<32x128xf32>
    %152 = arith.mulf %151, %148 : vector<32x128xf32>
    %153 = arith.addf %135, %150 : vector<32x128xf32>
    %154 = arith.addf %136, %152 : vector<32x128xf32>
    %155 = arith.mulf %145, %150 : vector<32x128xf32>
    %156 = arith.mulf %148, %152 : vector<32x128xf32>
    %157 = arith.addf %155, %156 : vector<32x128xf32>
    %158 = arith.addf %140, %157 : vector<32x128xf32>
    %159 = arith.mulf %148, %150 : vector<32x128xf32>
    %160 = arith.addf %142, %159 : vector<32x128xf32>
    %c9 = arith.constant 9 : index
    %161 = arith.index_cast %2 : i32 to index
    %c0_45 = arith.constant 0 : index
    %162 = vector.load %arg1[%c9, %161, %c0_45] : memref<16x32x128xf32, #tpu.memory_space<vmem>>, vector<1x32x128xf32>
    %163 = vector.shape_cast %162 : vector<1x32x128xf32> to vector<32x128xf32>
    %c9_46 = arith.constant 9 : index
    %164 = arith.index_cast %2 : i32 to index
    %c0_47 = arith.constant 0 : index
    %165 = vector.load %arg2[%c9_46, %164, %c0_47] : memref<16x32x128xf32, #tpu.memory_space<vmem>>, vector<1x32x128xf32>
    %166 = vector.shape_cast %165 : vector<1x32x128xf32> to vector<32x128xf32>
    %cst_48 = arith.constant 8.822890e-02 : f32
    %167 = vector.broadcast %cst_48 : f32 to vector<32x128xf32>
    %168 = arith.mulf %167, %163 : vector<32x128xf32>
    %cst_49 = arith.constant 8.822890e-02 : f32
    %169 = vector.broadcast %cst_49 : f32 to vector<32x128xf32>
    %170 = arith.mulf %169, %166 : vector<32x128xf32>
    %171 = arith.addf %153, %168 : vector<32x128xf32>
    %172 = arith.addf %154, %170 : vector<32x128xf32>
    %173 = arith.mulf %163, %168 : vector<32x128xf32>
    %174 = arith.mulf %166, %170 : vector<32x128xf32>
    %175 = arith.addf %173, %174 : vector<32x128xf32>
    %176 = arith.addf %158, %175 : vector<32x128xf32>
    %177 = arith.mulf %166, %168 : vector<32x128xf32>
    %178 = arith.addf %160, %177 : vector<32x128xf32>
    %c10 = arith.constant 10 : index
    %179 = arith.index_cast %2 : i32 to index
    %c0_50 = arith.constant 0 : index
    %180 = vector.load %arg1[%c10, %179, %c0_50] : memref<16x32x128xf32, #tpu.memory_space<vmem>>, vector<1x32x128xf32>
    %181 = vector.shape_cast %180 : vector<1x32x128xf32> to vector<32x128xf32>
    %c10_51 = arith.constant 10 : index
    %182 = arith.index_cast %2 : i32 to index
    %c0_52 = arith.constant 0 : index
    %183 = vector.load %arg2[%c10_51, %182, %c0_52] : memref<16x32x128xf32, #tpu.memory_space<vmem>>, vector<1x32x128xf32>
    %184 = vector.shape_cast %183 : vector<1x32x128xf32> to vector<32x128xf32>
    %cst_53 = arith.constant 0.110184565 : f32
    %185 = vector.broadcast %cst_53 : f32 to vector<32x128xf32>
    %186 = arith.mulf %185, %181 : vector<32x128xf32>
    %cst_54 = arith.constant 0.110184565 : f32
    %187 = vector.broadcast %cst_54 : f32 to vector<32x128xf32>
    %188 = arith.mulf %187, %184 : vector<32x128xf32>
    %189 = arith.addf %171, %186 : vector<32x128xf32>
    %190 = arith.addf %172, %188 : vector<32x128xf32>
    %191 = arith.mulf %181, %186 : vector<32x128xf32>
    %192 = arith.mulf %184, %188 : vector<32x128xf32>
    %193 = arith.addf %191, %192 : vector<32x128xf32>
    %194 = arith.addf %176, %193 : vector<32x128xf32>
    %195 = arith.mulf %184, %186 : vector<32x128xf32>
    %196 = arith.addf %178, %195 : vector<32x128xf32>
    %c11 = arith.constant 11 : index
    %197 = arith.index_cast %2 : i32 to index
    %c0_55 = arith.constant 0 : index
    %198 = vector.load %arg1[%c11, %197, %c0_55] : memref<16x32x128xf32, #tpu.memory_space<vmem>>, vector<1x32x128xf32>
    %199 = vector.shape_cast %198 : vector<1x32x128xf32> to vector<32x128xf32>
    %c11_56 = arith.constant 11 : index
    %200 = arith.index_cast %2 : i32 to index
    %c0_57 = arith.constant 0 : index
    %201 = vector.load %arg2[%c11_56, %200, %c0_57] : memref<16x32x128xf32, #tpu.memory_space<vmem>>, vector<1x32x128xf32>
    %202 = vector.shape_cast %201 : vector<1x32x128xf32> to vector<32x128xf32>
    %cst_58 = arith.constant 8.822890e-02 : f32
    %203 = vector.broadcast %cst_58 : f32 to vector<32x128xf32>
    %204 = arith.mulf %203, %199 : vector<32x128xf32>
    %cst_59 = arith.constant 8.822890e-02 : f32
    %205 = vector.broadcast %cst_59 : f32 to vector<32x128xf32>
    %206 = arith.mulf %205, %202 : vector<32x128xf32>
    %207 = arith.addf %189, %204 : vector<32x128xf32>
    %208 = arith.addf %190, %206 : vector<32x128xf32>
    %209 = arith.mulf %199, %204 : vector<32x128xf32>
    %210 = arith.mulf %202, %206 : vector<32x128xf32>
    %211 = arith.addf %209, %210 : vector<32x128xf32>
    %212 = arith.addf %194, %211 : vector<32x128xf32>
    %213 = arith.mulf %202, %204 : vector<32x128xf32>
    %214 = arith.addf %196, %213 : vector<32x128xf32>
    %c12 = arith.constant 12 : index
    %215 = arith.index_cast %2 : i32 to index
    %c0_60 = arith.constant 0 : index
    %216 = vector.load %arg1[%c12, %215, %c0_60] : memref<16x32x128xf32, #tpu.memory_space<vmem>>, vector<1x32x128xf32>
    %217 = vector.shape_cast %216 : vector<1x32x128xf32> to vector<32x128xf32>
    %c12_61 = arith.constant 12 : index
    %218 = arith.index_cast %2 : i32 to index
    %c0_62 = arith.constant 0 : index
    %219 = vector.load %arg2[%c12_61, %218, %c0_62] : memref<16x32x128xf32, #tpu.memory_space<vmem>>, vector<1x32x128xf32>
    %220 = vector.shape_cast %219 : vector<1x32x128xf32> to vector<32x128xf32>
    %cst_63 = arith.constant 0.0362719856 : f32
    %221 = vector.broadcast %cst_63 : f32 to vector<32x128xf32>
    %222 = arith.mulf %221, %217 : vector<32x128xf32>
    %cst_64 = arith.constant 0.0362719856 : f32
    %223 = vector.broadcast %cst_64 : f32 to vector<32x128xf32>
    %224 = arith.mulf %223, %220 : vector<32x128xf32>
    %225 = arith.addf %207, %222 : vector<32x128xf32>
    %226 = arith.addf %208, %224 : vector<32x128xf32>
    %227 = arith.mulf %217, %222 : vector<32x128xf32>
    %228 = arith.mulf %220, %224 : vector<32x128xf32>
    %229 = arith.addf %227, %228 : vector<32x128xf32>
    %230 = arith.addf %212, %229 : vector<32x128xf32>
    %231 = arith.mulf %220, %222 : vector<32x128xf32>
    %232 = arith.addf %214, %231 : vector<32x128xf32>
    %c13 = arith.constant 13 : index
    %233 = arith.index_cast %2 : i32 to index
    %c0_65 = arith.constant 0 : index
    %234 = vector.load %arg1[%c13, %233, %c0_65] : memref<16x32x128xf32, #tpu.memory_space<vmem>>, vector<1x32x128xf32>
    %235 = vector.shape_cast %234 : vector<1x32x128xf32> to vector<32x128xf32>
    %c13_66 = arith.constant 13 : index
    %236 = arith.index_cast %2 : i32 to index
    %c0_67 = arith.constant 0 : index
    %237 = vector.load %arg2[%c13_66, %236, %c0_67] : memref<16x32x128xf32, #tpu.memory_space<vmem>>, vector<1x32x128xf32>
    %238 = vector.shape_cast %237 : vector<1x32x128xf32> to vector<32x128xf32>
    %cst_68 = arith.constant 0.0706481859 : f32
    %239 = vector.broadcast %cst_68 : f32 to vector<32x128xf32>
    %240 = arith.mulf %239, %235 : vector<32x128xf32>
    %cst_69 = arith.constant 0.0706481859 : f32
    %241 = vector.broadcast %cst_69 : f32 to vector<32x128xf32>
    %242 = arith.mulf %241, %238 : vector<32x128xf32>
    %243 = arith.addf %225, %240 : vector<32x128xf32>
    %244 = arith.addf %226, %242 : vector<32x128xf32>
    %245 = arith.mulf %235, %240 : vector<32x128xf32>
    %246 = arith.mulf %238, %242 : vector<32x128xf32>
    %247 = arith.addf %245, %246 : vector<32x128xf32>
    %248 = arith.addf %230, %247 : vector<32x128xf32>
    %249 = arith.mulf %238, %240 : vector<32x128xf32>
    %250 = arith.addf %232, %249 : vector<32x128xf32>
    %c14 = arith.constant 14 : index
    %251 = arith.index_cast %2 : i32 to index
    %c0_70 = arith.constant 0 : index
    %252 = vector.load %arg1[%c14, %251, %c0_70] : memref<16x32x128xf32, #tpu.memory_space<vmem>>, vector<1x32x128xf32>
    %253 = vector.shape_cast %252 : vector<1x32x128xf32> to vector<32x128xf32>
    %c14_71 = arith.constant 14 : index
    %254 = arith.index_cast %2 : i32 to index
    %c0_72 = arith.constant 0 : index
    %255 = vector.load %arg2[%c14_71, %254, %c0_72] : memref<16x32x128xf32, #tpu.memory_space<vmem>>, vector<1x32x128xf32>
    %256 = vector.shape_cast %255 : vector<1x32x128xf32> to vector<32x128xf32>
    %cst_73 = arith.constant 8.822890e-02 : f32
    %257 = vector.broadcast %cst_73 : f32 to vector<32x128xf32>
    %258 = arith.mulf %257, %253 : vector<32x128xf32>
    %cst_74 = arith.constant 8.822890e-02 : f32
    %259 = vector.broadcast %cst_74 : f32 to vector<32x128xf32>
    %260 = arith.mulf %259, %256 : vector<32x128xf32>
    %261 = arith.addf %243, %258 : vector<32x128xf32>
    %262 = arith.addf %244, %260 : vector<32x128xf32>
    %263 = arith.mulf %253, %258 : vector<32x128xf32>
    %264 = arith.mulf %256, %260 : vector<32x128xf32>
    %265 = arith.addf %263, %264 : vector<32x128xf32>
    %266 = arith.addf %248, %265 : vector<32x128xf32>
    %267 = arith.mulf %256, %258 : vector<32x128xf32>
    %268 = arith.addf %250, %267 : vector<32x128xf32>
    %c15 = arith.constant 15 : index
    %269 = arith.index_cast %2 : i32 to index
    %c0_75 = arith.constant 0 : index
    %270 = vector.load %arg1[%c15, %269, %c0_75] : memref<16x32x128xf32, #tpu.memory_space<vmem>>, vector<1x32x128xf32>
    %271 = vector.shape_cast %270 : vector<1x32x128xf32> to vector<32x128xf32>
    %c15_76 = arith.constant 15 : index
    %272 = arith.index_cast %2 : i32 to index
    %c0_77 = arith.constant 0 : index
    %273 = vector.load %arg2[%c15_76, %272, %c0_77] : memref<16x32x128xf32, #tpu.memory_space<vmem>>, vector<1x32x128xf32>
    %274 = vector.shape_cast %273 : vector<1x32x128xf32> to vector<32x128xf32>
    %cst_78 = arith.constant 0.0706481859 : f32
    %275 = vector.broadcast %cst_78 : f32 to vector<32x128xf32>
    %276 = arith.mulf %275, %271 : vector<32x128xf32>
    %cst_79 = arith.constant 0.0706481859 : f32
    %277 = vector.broadcast %cst_79 : f32 to vector<32x128xf32>
    %278 = arith.mulf %277, %274 : vector<32x128xf32>
    %279 = arith.addf %261, %276 : vector<32x128xf32>
    %280 = arith.addf %262, %278 : vector<32x128xf32>
    %281 = arith.mulf %271, %276 : vector<32x128xf32>
    %282 = arith.mulf %274, %278 : vector<32x128xf32>
    %283 = arith.addf %281, %282 : vector<32x128xf32>
    %284 = arith.addf %266, %283 : vector<32x128xf32>
    %285 = arith.mulf %274, %276 : vector<32x128xf32>
    %286 = arith.addf %268, %285 : vector<32x128xf32>
    %287 = arith.mulf %279, %279 : vector<32x128xf32>
    %288 = arith.mulf %280, %280 : vector<32x128xf32>
    %289 = arith.mulf %279, %280 : vector<32x128xf32>
    %290 = arith.addf %287, %288 : vector<32x128xf32>
    %291 = arith.subf %286, %289 : vector<32x128xf32>
    %292 = arith.subf %284, %290 : vector<32x128xf32>
    %cst_80 = arith.constant 2.000000e+00 : f32
    %293 = vector.broadcast %cst_80 : f32 to vector<32x128xf32>
    %294 = arith.mulf %293, %289 : vector<32x128xf32>
    %cst_81 = arith.constant 9.99999974E-5 : f32
    %295 = vector.broadcast %cst_81 : f32 to vector<32x128xf32>
    %296 = arith.addf %294, %295 : vector<32x128xf32>
    %cst_82 = arith.constant 2.000000e+00 : f32
    %297 = vector.broadcast %cst_82 : f32 to vector<32x128xf32>
    %298 = arith.mulf %297, %291 : vector<32x128xf32>
    %cst_83 = arith.constant 8.99999984E-4 : f32
    %299 = vector.broadcast %cst_83 : f32 to vector<32x128xf32>
    %300 = arith.addf %298, %299 : vector<32x128xf32>
    %301 = arith.mulf %296, %300 : vector<32x128xf32>
    %cst_84 = arith.constant 9.99999974E-5 : f32
    %302 = vector.broadcast %cst_84 : f32 to vector<32x128xf32>
    %303 = arith.addf %290, %302 : vector<32x128xf32>
    %cst_85 = arith.constant 8.99999984E-4 : f32
    %304 = vector.broadcast %cst_85 : f32 to vector<32x128xf32>
    %305 = arith.addf %292, %304 : vector<32x128xf32>
    %306 = arith.mulf %303, %305 : vector<32x128xf32>
    %307 = arith.divf %301, %306 : vector<32x128xf32>
    %308 = vector.extract_strided_slice %307 {offsets = [0, 0], sizes = [8, 128], strides = [1, 1]} : vector<32x128xf32> to vector<8x128xf32>
    %309 = vector.extract_strided_slice %307 {offsets = [8, 0], sizes = [8, 128], strides = [1, 1]} : vector<32x128xf32> to vector<8x128xf32>
    %310 = arith.addf %308, %309 : vector<8x128xf32>
    %311 = vector.extract_strided_slice %307 {offsets = [16, 0], sizes = [8, 128], strides = [1, 1]} : vector<32x128xf32> to vector<8x128xf32>
    %312 = arith.addf %310, %311 : vector<8x128xf32>
    %313 = vector.extract_strided_slice %307 {offsets = [24, 0], sizes = [8, 128], strides = [1, 1]} : vector<32x128xf32> to vector<8x128xf32>
    %314 = arith.addf %312, %313 : vector<8x128xf32>
    %315 = arith.addf %0, %314 : vector<8x128xf32>
    %c1_i32 = arith.constant 1 : i32
    %c0_86 = arith.constant 0 : index
    %c0_87 = arith.constant 0 : index
    %c0_88 = arith.constant 0 : index
    %316 = vector.load %arg3[%c0_86, %c0_87, %c0_88] : memref<1x8x128xf32, #tpu.memory_space<vmem>>, vector<1x8x128xf32>
    %317 = vector.shape_cast %316 : vector<1x8x128xf32> to vector<8x128xf32>
    %318 = vector.shape_cast %315 : vector<8x128xf32> to vector<1x8x128xf32>
    tpu.vector_store %arg3[%c0_86, %c0_87, %c0_88], %318 {strides = array<i32>} : memref<1x8x128xf32, #tpu.memory_space<vmem>>, vector<1x8x128xf32>,
    return
  }
  func.func @transform_0(%arg0: i32) -> (i32, i32, i32) {
    %c0_i32 = arith.constant 0 : i32
    %c0_i32_0 = arith.constant 0 : i32
    %c0_i32_1 = arith.constant 0 : i32
    return %c0_i32, %arg0, %c0_i32_0 : i32, i32, i32
  }
  func.func @transform_1(%arg0: i32) -> (i32, i32, i32) {
    %c0_i32 = arith.constant 0 : i32
    %c0_i32_0 = arith.constant 0 : i32
    %c0_i32_1 = arith.constant 0 : i32
    return %c0_i32, %arg0, %c0_i32_0 : i32, i32, i32
  }
  func.func @transform_2(%arg0: i32) -> (i32, i32, i32) {
    %c0_i32 = arith.constant 0 : i32
    %c0_i32_0 = arith.constant 0 : i32
    %c0_i32_1 = arith.constant 0 : i32
    return %arg0, %c0_i32, %c0_i32_0 : i32, i32, i32
  }
}

</mosaic_0001>

<bundles_post_ra>
// kernel: s3im_loss.1
= control target key start
LH: loop header
LB: loop body
LE: loop exit
PB: predicated region body
PF: predicated region fallthrough
CT: control target
= control target key end

     0   :  { %s1558_s0 = inlined_call_operand.vmem [shape: f32[16,32,128], index: 0, kind: input, shape index: {}]   ;;  %s1559_s1 = inlined_call_operand.vmem [shape: f32[16,32,128], index: 1, kind: input, shape index: {}]   ;;  %s1560_s2 = inlined_call_operand.vmem [shape: f32[1,8,128], index: 2, kind: output, shape index: {}]  }
   0x1   :  { %v11_v0 = vld [vmem:[%s1558_s0] sm:$0xff]  ;;  %v12_v1 = vld [vmem:[%s1558_s0 + $0x8] sm:$0xff]  ;;  %v13_v2 = vld [vmem:[%s1558_s0 + $0x10] sm:$0xff] }
   0x2   :  { %v14_v3 = vld [vmem:[%s1558_s0 + $0x18] sm:$0xff]  ;;  %v15_v4 = vld [vmem:[%s1559_s1] sm:$0xff]  ;;  %v16_v5 = vld [vmem:[%s1559_s1 + $0x8] sm:$0xff]  ;;  %v19_v8 = vmul.f32 0.01862266, %v11_v0 }
   0x3   :  { %v17_v6 = vld [vmem:[%s1559_s1 + $0x10] sm:$0xff]  ;;  %v18_v7 = vld [vmem:[%s1559_s1 + $0x18] sm:$0xff]  ;;  %v20_v9 = vmul.f32 0.01862266, %v12_v1  ;;  %v21_v10 = vmul.f32 0.01862266, %v13_v2 }
   0x4   :  { %v22_v11 = vmul.f32 0.01862266, %v14_v3  ;;  %v23_v12 = vmul.f32 0.01862266, %v15_v4  ;;  %v24_v13 = vmul.f32 0.01862266, %v16_v5  ;;  %v27_v18 = vmul.f32 %v19_v8, %v11_v0 }
   0x5   :  { %v25_v14 = vmul.f32 0.01862266, %v17_v6  ;;  %v1078_v15 = vmul.f32 0.01862266, %v18_v7  ;;  %v911_v16 = vld [vmem:[%s1558_s0 + $0x20] sm:$0xff]  ;;  %v912_v17 = vld [vmem:[%s1558_s0 + $0x28] sm:$0xff]  ;;  %v28_v19 = vmul.f32 %v20_v9, %v12_v1  ;;  %v29_v23 = vmul.f32 %v21_v10, %v13_v2 }
   0x6   :  { %v913_v20 = vld [vmem:[%s1558_s0 + $0x30] sm:$0xff]  ;;  %v915_v21 = vld [vmem:[%s1559_s1 + $0x20] sm:$0xff]  ;;  %v916_v22 = vld [vmem:[%s1559_s1 + $0x28] sm:$0xff]  ;;  %v30_v24 = vmul.f32 %v22_v11, %v14_v3  ;;  %v31_v25 = vmul.f32 %v23_v12, %v15_v4  ;;  %v32_v26 = vmul.f32 %v24_v13, %v16_v5  ;;  %v54_v32 = vmul.f32 0.036271986, %v911_v16 }
   0x7   :  { %v914_v27 = vld [vmem:[%s1558_s0 + $0x38] sm:$0xff]  ;;  %v917_v28 = vld [vmem:[%s1559_s1 + $0x30] sm:$0xff]  ;;  %v33_v30 = vmul.f32 %v25_v14, %v17_v6  ;;  %v34_v31 = vmul.f32 %v1078_v15, %v18_v7  ;;  %v55_v33 = vmul.f32 0.036271986, %v912_v17  ;;  %v56_v34 = vmul.f32 0.036271986, %v913_v20 }
   0x8   :  { %v918_v29 = vld [vmem:[%s1559_s1 + $0x38] sm:$0xff]  ;;  %v58_v35 = vmul.f32 0.036271986, %v915_v21  ;;  %v59_v36 = vmul.f32 0.036271986, %v916_v22  ;;  %v35_v40 = vadd.f32 %v31_v25, %v27_v18  ;;  %v39_v41 = vmul.f32 %v19_v8, %v15_v4  ;;  %v919_v60 = vld [vmem:[%s1558_s0 + $0x40] sm:$0xff] }
   0x9   :  { %v57_v37 = vmul.f32 0.036271986, %v914_v27  ;;  %v60_v38 = vmul.f32 0.036271986, %v917_v28  ;;  %v61_v39 = vmul.f32 0.036271986, %v918_v29  ;;  %v40_v42 = vmul.f32 %v20_v9, %v16_v5 }
   0xa   :  { %v41_v43 = vmul.f32 %v21_v10, %v17_v6  ;;  %v36_v44 = vadd.f32 %v32_v26, %v28_v19  ;;  %v37_v45 = vadd.f32 %v33_v30, %v29_v23  ;;  %v38_v46 = vadd.f32 %v34_v31, %v30_v24  ;;  %v920_v1 = vld [vmem:[%s1558_s0 + $0x48] sm:$0xff]  ;;  %v923_v2 = vld [vmem:[%s1559_s1 + $0x40] sm:$0xff] }
   0xb   :  { %v42_v47 = vmul.f32 %v22_v11, %v18_v7  ;;  %v70_v48 = vmul.f32 %v911_v16, %v54_v32  ;;  %v71_v49 = vmul.f32 %v912_v17, %v55_v33  ;;  %v74_v50 = vmul.f32 %v915_v21, %v58_v35  ;;  %v924_v3 = vld [vmem:[%s1559_s1 + $0x48] sm:$0xff] }
   0xc   :  { %v75_v51 = vmul.f32 %v916_v22, %v59_v36  ;;  %v72_v52 = vmul.f32 %v913_v20, %v56_v34  ;;  %v73_v53 = vmul.f32 %v914_v27, %v57_v37  ;;  %v76_v54 = vmul.f32 %v917_v28, %v60_v38 }
   0xd   :  { %v77_v55 = vmul.f32 %v918_v29, %v61_v39  ;;  %v62_v56 = vadd.f32 %v54_v32, %v19_v8  ;;  %v63_v57 = vadd.f32 %v55_v33, %v20_v9  ;;  %v64_v58 = vadd.f32 %v56_v34, %v21_v10  ;;  %v921_v8 = vld [vmem:[%s1558_s0 + $0x50] sm:$0xff] }
   0xe   :  { %v65_v59 = vadd.f32 %v57_v37, %v22_v11  ;;  %v66_v61 = vadd.f32 %v58_v35, %v23_v12  ;;  %v67_v62 = vadd.f32 %v59_v36, %v24_v13  ;;  %v86_v63 = vmul.f32 %v915_v21, %v54_v32  ;;  %v925_v9 = vld [vmem:[%s1559_s1 + $0x50] sm:$0xff]  ;;  %v922_v13 = vld [vmem:[%s1558_s0 + $0x58] sm:$0xff] }
   0xf   :  { %v87_v0 = vmul.f32 %v916_v22, %v55_v33  ;;  %v68_v4 = vadd.f32 %v60_v38, %v25_v14  ;;  %v78_v5 = vadd.f32 %v74_v50, %v70_v48  ;;  %v79_v6 = vadd.f32 %v75_v51, %v71_v49  ;;  %v926_v14 = vld [vmem:[%s1559_s1 + $0x58] sm:$0xff]  ;;  %v928_v50 = vld [vmem:[%s1558_s0 + $0x68] sm:$0xff]  ;;  %v929_v51 = vld [vmem:[%s1558_s0 + $0x70] sm:$0xff] }
  0x10   :  { %v88_v7 = vmul.f32 %v917_v28, %v56_v34  ;;  %v80_v10 = vadd.f32 %v76_v54, %v72_v52  ;;  %v81_v11 = vadd.f32 %v77_v55, %v73_v53  ;;  %v89_v12 = vmul.f32 %v918_v29, %v57_v37  ;;  %v932_v52 = vld [vmem:[%s1559_s1 + $0x68] sm:$0xff] }
  0x11   :  { %v105_v16 = vmul.f32 0.04529823, %v919_v60  ;;  %v69_v17 = vadd.f32 %v61_v39, %v1078_v15  ;;  %v106_v18 = vmul.f32 0.04529823, %v920_v1  ;;  %v109_v19 = vmul.f32 0.04529823, %v923_v2 }
  0x12   :  { %v110_v20 = vmul.f32 0.04529823, %v924_v3  ;;  %v90_v21 = vadd.f32 %v86_v63, %v39_v41  ;;  %v91_v22 = vadd.f32 %v87_v0, %v40_v42  ;;  %v107_v23 = vmul.f32 0.04529823, %v921_v8 }
  0x13   :  { %v111_v24 = vmul.f32 0.04529823, %v925_v9  ;;  %v82_v25 = vadd.f32 %v78_v5, %v35_v40  ;;  %v92_v26 = vadd.f32 %v88_v7, %v41_v43  ;;  %v108_v27 = vmul.f32 0.04529823, %v922_v13  ;;  %v927_v40 = vld [vmem:[%s1558_s0 + $0x60] sm:$0xff] }
  0x14   :  { %v112_v28 = vmul.f32 0.04529823, %v926_v14  ;;  %v83_v29 = vadd.f32 %v79_v6, %v36_v44  ;;  %v84_v30 = vadd.f32 %v80_v10, %v37_v45  ;;  %v85_v31 = vadd.f32 %v81_v11, %v38_v46  ;;  %v931_v43 = vld [vmem:[%s1559_s1 + $0x60] sm:$0xff] }
  0x15   :  { %v93_v32 = vadd.f32 %v89_v12, %v42_v47  ;;  %v121_v33 = vmul.f32 %v919_v60, %v105_v16  ;;  %v122_v34 = vmul.f32 %v920_v1, %v106_v18  ;;  %v125_v35 = vmul.f32 %v923_v2, %v109_v19 }
  0x16   :  { %v126_v36 = vmul.f32 %v924_v3, %v110_v20  ;;  %v113_v15 = vadd.f32 %v105_v16, %v62_v56  ;;  %v114_v37 = vadd.f32 %v106_v18, %v63_v57  ;;  %v123_v38 = vmul.f32 %v921_v8, %v107_v23  ;;  %v930_v57 = vld [vmem:[%s1558_s0 + $0x78] sm:$0xff] }
  0x17   :  { %v127_v39 = vmul.f32 %v925_v9, %v111_v24  ;;  %v115_v41 = vadd.f32 %v107_v23, %v64_v58  ;;  %v116_v42 = vadd.f32 %v108_v27, %v65_v59  ;;  %v124_v48 = vmul.f32 %v922_v13, %v108_v27  ;;  %v933_v58 = vld [vmem:[%s1559_s1 + $0x70] sm:$0xff]  ;;  %v934_v59 = vld [vmem:[%s1559_s1 + $0x78] sm:$0xff] }
  0x18   :  { %v128_v49 = vmul.f32 %v926_v14, %v112_v28  ;;  %v117_v44 = vadd.f32 %v109_v19, %v66_v61  ;;  %v118_v45 = vadd.f32 %v110_v20, %v67_v62  ;;  %v1136_v46 = vadd.f32 %v111_v24, %v68_v4 }
  0x19   :  { %v137_v47 = vmul.f32 %v923_v2, %v105_v16  ;;  %v129_v53 = vadd.f32 %v125_v35, %v121_v33  ;;  %v130_v54 = vadd.f32 %v126_v36, %v122_v34  ;;  %v138_v55 = vmul.f32 %v924_v3, %v106_v18 }
  0x1a   :  { %v139_v56 = vmul.f32 %v925_v9, %v107_v23  ;;  %v131_v60 = vadd.f32 %v127_v39, %v123_v38  ;;  %v140_v61 = vmul.f32 %v926_v14, %v108_v27  ;;  %v156_v62 = vmul.f32 0.036271986, %v927_v40 }
  0x1b   :  { %v160_v63 = vmul.f32 0.036271986, %v931_v43  ;;  %v132_v0 = vadd.f32 %v128_v49, %v124_v48  ;;  %v157_v1 = vmul.f32 0.036271986, %v928_v50  ;;  %v158_v2 = vmul.f32 0.036271986, %v929_v51 }
  0x1c   :  { %v161_v3 = vmul.f32 0.036271986, %v932_v52  ;;  %v120_v4 = vadd.f32 %v112_v28, %v69_v17  ;;  %v159_v5 = vmul.f32 0.036271986, %v930_v57  ;;  %v162_v6 = vmul.f32 0.036271986, %v933_v58 }
  0x1d   :  { %v163_v7 = vmul.f32 0.036271986, %v934_v59  ;;  %v133_v8 = vadd.f32 %v129_v53, %v82_v25  ;;  %v134_v9 = vadd.f32 %v130_v54, %v83_v29  ;;  %v141_v10 = vadd.f32 %v137_v47, %v90_v21  ;;  %v935_v21 = vld [vmem:[%s1558_s0 + $0x80] sm:$0xff]  ;;  %v941_v48 = vld [vmem:[%s1559_s1 + $0x90] sm:$0xff]  ;;  %v942_v49 = vld [vmem:[%s1559_s1 + $0x98] sm:$0xff] }
  0x1e   :  { %v142_v11 = vadd.f32 %v138_v55, %v91_v22  ;;  %v143_v12 = vadd.f32 %v139_v56, %v92_v26  ;;  %v144_v13 = vadd.f32 %v140_v61, %v93_v32  ;;  %v172_v16 = vmul.f32 %v927_v40, %v156_v62  ;;  %v936_v22 = vld [vmem:[%s1558_s0 + $0x88] sm:$0xff]  ;;  %v938_v32 = vld [vmem:[%s1558_s0 + $0x98] sm:$0xff] }
  0x1f   :  { %v176_v18 = vmul.f32 %v931_v43, %v160_v63  ;;  %v135_v19 = vadd.f32 %v131_v60, %v84_v30  ;;  %v136_v14 = vadd.f32 %v132_v0, %v85_v31  ;;  %v173_v20 = vmul.f32 %v928_v50, %v157_v1  ;;  %v937_v31 = vld [vmem:[%s1558_s0 + $0x90] sm:$0xff] }
  0x20   :  { %v177_v23 = vmul.f32 %v932_v52, %v161_v3  ;;  %v174_v24 = vmul.f32 %v929_v51, %v158_v2  ;;  %v175_v27 = vmul.f32 %v930_v57, %v159_v5  ;;  %v178_v33 = vmul.f32 %v933_v58, %v162_v6 }
  0x21   :  { %v179_v34 = vmul.f32 %v934_v59, %v163_v7  ;;  %v164_v17 = vadd.f32 %v156_v62, %v113_v15  ;;  %v165_v28 = vadd.f32 %v157_v1, %v114_v37  ;;  %v166_v35 = vadd.f32 %v158_v2, %v115_v41  ;;  %v939_v15 = vld [vmem:[%s1559_s1 + $0x80] sm:$0xff] }
  0x22   :  { %v167_v36 = vadd.f32 %v159_v5, %v116_v42  ;;  %v168_v25 = vadd.f32 %v160_v63, %v117_v44  ;;  %v169_v26 = vadd.f32 %v161_v3, %v118_v45  ;;  %v180_v29 = vadd.f32 %v176_v18, %v172_v16  ;;  %v940_v42 = vld [vmem:[%s1559_s1 + $0x88] sm:$0xff] }
  0x23   :  { %v188_v30 = vmul.f32 %v931_v43, %v156_v62  ;;  %v181_v37 = vadd.f32 %v177_v23, %v173_v20  ;;  %v189_v38 = vmul.f32 %v932_v52, %v157_v1  ;;  %v190_v39 = vmul.f32 %v933_v58, %v158_v2 }
  0x24   :  { %v191_v41 = vmul.f32 %v934_v59, %v159_v5  ;;  %v182_v40 = vadd.f32 %v178_v33, %v174_v24  ;;  %v183_v43 = vadd.f32 %v179_v34, %v175_v27  ;;  %v207_v44 = vmul.f32 0.036271986, %v935_v21 }
  0x25   :  { %v208_v45 = vmul.f32 0.036271986, %v936_v22  ;;  %v170_v47 = vadd.f32 %v162_v6, %v1136_v46  ;;  %v209_v50 = vmul.f32 0.036271986, %v937_v31  ;;  %v210_v51 = vmul.f32 0.036271986, %v938_v32 }
  0x26   :  { %v211_v52 = vmul.f32 0.036271986, %v939_v15  ;;  %v171_v53 = vadd.f32 %v163_v7, %v120_v4  ;;  %v212_v54 = vmul.f32 0.036271986, %v940_v42  ;;  %v213_v55 = vmul.f32 0.036271986, %v941_v48 }
  0x27   :  { %v214_v56 = vmul.f32 0.036271986, %v942_v49  ;;  %v184_v57 = vadd.f32 %v180_v29, %v133_v8  ;;  %v192_v58 = vadd.f32 %v188_v30, %v141_v10  ;;  %v193_v59 = vadd.f32 %v189_v38, %v142_v11  ;;  %v943_v8 = vld [vmem:[%s1558_s0 + $0xa0] sm:$0xff] }
  0x28   :  { %v194_v60 = vadd.f32 %v190_v39, %v143_v12  ;;  %v185_v61 = vadd.f32 %v181_v37, %v134_v9  ;;  %v186_v62 = vadd.f32 %v182_v40, %v135_v19  ;;  %v187_v63 = vadd.f32 %v183_v43, %v136_v14  ;;  %v947_v19 = vld [vmem:[%s1559_s1 + $0xa0] sm:$0xff]  ;;  %v948_v14 = vld [vmem:[%s1559_s1 + $0xa8] sm:$0xff] }
  0x29   :  { %v195_v0 = vadd.f32 %v191_v41, %v144_v13  ;;  %v223_v1 = vmul.f32 %v935_v21, %v207_v44  ;;  %v224_v2 = vmul.f32 %v936_v22, %v208_v45  ;;  %v225_v3 = vmul.f32 %v937_v31, %v209_v50  ;;  %v944_v13 = vld [vmem:[%s1558_s0 + $0xa8] sm:$0xff]  ;;  %v946_v22 = vld [vmem:[%s1558_s0 + $0xb8] sm:$0xff] }
  0x2a   :  { %v227_v5 = vmul.f32 %v939_v15, %v211_v52  ;;  %v226_v46 = vmul.f32 %v938_v32, %v210_v51  ;;  %v228_v6 = vmul.f32 %v940_v42, %v212_v54  ;;  %v229_v16 = vmul.f32 %v941_v48, %v213_v55 }
  0x2b   :  { %v230_v18 = vmul.f32 %v942_v49, %v214_v56  ;;  %v215_v4 = vadd.f32 %v207_v44, %v164_v17  ;;  %v216_v7 = vadd.f32 %v208_v45, %v165_v28  ;;  %v217_v20 = vadd.f32 %v209_v50, %v166_v35  ;;  %v945_v17 = vld [vmem:[%s1558_s0 + $0xb0] sm:$0xff] }
  0x2c   :  { %v218_v23 = vadd.f32 %v210_v51, %v167_v36  ;;  %v219_v9 = vadd.f32 %v211_v52, %v168_v25  ;;  %v220_v10 = vadd.f32 %v212_v54, %v169_v26  ;;  %v239_v11 = vmul.f32 %v939_v15, %v207_v44  ;;  %v949_v28 = vld [vmem:[%s1559_s1 + $0xb0] sm:$0xff]  ;;  %v950_v25 = vld [vmem:[%s1559_s1 + $0xb8] sm:$0xff] }
  0x2d   :  { %v240_v12 = vmul.f32 %v940_v42, %v208_v45  ;;  %v221_v24 = vadd.f32 %v213_v55, %v170_v47  ;;  %v231_v27 = vadd.f32 %v227_v5, %v223_v1  ;;  %v241_v33 = vmul.f32 %v941_v48, %v209_v50  ;;  %v953_v5 = vld [vmem:[%s1558_s0 + $0xd0] sm:$0xff] }
  0x2e   :  { %v242_v34 = vmul.f32 %v942_v49, %v210_v51  ;;  %v232_v35 = vadd.f32 %v228_v6, %v224_v2  ;;  %v233_v36 = vadd.f32 %v229_v16, %v225_v3  ;;  %v234_v21 = vadd.f32 %v230_v18, %v226_v46  ;;  %v952_v3 = vld [vmem:[%s1558_s0 + $0xc8] sm:$0xff] }
  0x2f   :  { %v258_v26 = vmul.f32 0.070648186, %v943_v8  ;;  %v222_v29 = vadd.f32 %v214_v56, %v171_v53  ;;  %v259_v30 = vmul.f32 0.070648186, %v944_v13  ;;  %v262_v31 = vmul.f32 0.070648186, %v947_v19 }
  0x30   :  { %v263_v32 = vmul.f32 0.070648186, %v948_v14  ;;  %v243_v15 = vadd.f32 %v239_v11, %v192_v58  ;;  %v244_v37 = vadd.f32 %v240_v12, %v193_v59  ;;  %v260_v38 = vmul.f32 0.070648186, %v945_v17  ;;  %v956_v46 = vld [vmem:[%s1559_s1 + $0xc8] sm:$0xff] }
  0x31   :  { %v264_v39 = vmul.f32 0.070648186, %v949_v28  ;;  %v245_v41 = vadd.f32 %v241_v33, %v194_v60  ;;  %v246_v42 = vadd.f32 %v242_v34, %v195_v0  ;;  %v261_v48 = vmul.f32 0.070648186, %v946_v22  ;;  %v951_v60 = vld [vmem:[%s1558_s0 + $0xc0] sm:$0xff] }
  0x32   :  { %v265_v49 = vmul.f32 0.070648186, %v950_v25  ;;  %v235_v40 = vadd.f32 %v231_v27, %v184_v57  ;;  %v236_v43 = vadd.f32 %v232_v35, %v185_v61  ;;  %v237_v44 = vadd.f32 %v233_v36, %v186_v62  ;;  %v955_v57 = vld [vmem:[%s1559_s1 + $0xc0] sm:$0xff] }
  0x33   :  { %v238_v45 = vadd.f32 %v234_v21, %v187_v63  ;;  %v274_v47 = vmul.f32 %v943_v8, %v258_v26  ;;  %v275_v50 = vmul.f32 %v944_v13, %v259_v30  ;;  %v278_v51 = vmul.f32 %v947_v19, %v262_v31 }
  0x34   :  { %v279_v52 = vmul.f32 %v948_v14, %v263_v32  ;;  %v266_v53 = vadd.f32 %v258_v26, %v215_v4  ;;  %v267_v54 = vadd.f32 %v259_v30, %v216_v7  ;;  %v276_v55 = vmul.f32 %v945_v17, %v260_v38  ;;  %v954_v7 = vld [vmem:[%s1558_s0 + $0xd8] sm:$0xff] }
  0x35   :  { %v280_v56 = vmul.f32 %v949_v28, %v264_v39  ;;  %v268_v58 = vadd.f32 %v260_v38, %v217_v20  ;;  %v269_v59 = vadd.f32 %v261_v48, %v218_v23  ;;  %v277_v1 = vmul.f32 %v946_v22, %v261_v48  ;;  %v957_v20 = vld [vmem:[%s1559_s1 + $0xd0] sm:$0xff]  ;;  %v958_v23 = vld [vmem:[%s1559_s1 + $0xd8] sm:$0xff] }
  0x36   :  { %v281_v2 = vmul.f32 %v950_v25, %v265_v49  ;;  %v270_v61 = vadd.f32 %v262_v31, %v219_v9  ;;  %v271_v62 = vadd.f32 %v263_v32, %v220_v10  ;;  %v1211_v63 = vadd.f32 %v264_v39, %v221_v24 }
  0x37   :  { %v290_v0 = vmul.f32 %v947_v19, %v258_v26  ;;  %v282_v6 = vadd.f32 %v278_v51, %v274_v47  ;;  %v283_v16 = vadd.f32 %v279_v52, %v275_v50  ;;  %v291_v18 = vmul.f32 %v948_v14, %v259_v30 }
  0x38   :  { %v292_v4 = vmul.f32 %v949_v28, %v260_v38  ;;  %v284_v8 = vadd.f32 %v280_v56, %v276_v55  ;;  %v293_v9 = vmul.f32 %v950_v25, %v261_v48  ;;  %v309_v10 = vmul.f32 0.0882289, %v951_v60 }
  0x39   :  { %v313_v11 = vmul.f32 0.0882289, %v955_v57  ;;  %v285_v12 = vadd.f32 %v281_v2, %v277_v1  ;;  %v310_v13 = vmul.f32 0.0882289, %v952_v3  ;;  %v311_v19 = vmul.f32 0.0882289, %v953_v5 }
  0x3a   :  { %v314_v14 = vmul.f32 0.0882289, %v956_v46  ;;  %v273_v24 = vadd.f32 %v265_v49, %v222_v29  ;;  %v312_v27 = vmul.f32 0.0882289, %v954_v7  ;;  %v315_v33 = vmul.f32 0.0882289, %v957_v20 }
  0x3b   :  { %v316_v34 = vmul.f32 0.0882289, %v958_v23  ;;  %v286_v17 = vadd.f32 %v282_v6, %v235_v40  ;;  %v287_v28 = vadd.f32 %v283_v16, %v236_v43  ;;  %v294_v35 = vadd.f32 %v290_v0, %v243_v15  ;;  %v959_v15 = vld [vmem:[%s1558_s0 + $0xe0] sm:$0xff]  ;;  %v965_v1 = vld [vmem:[%s1559_s1 + $0xf0] sm:$0xff]  ;;  %v966_v2 = vld [vmem:[%s1559_s1 + $0xf8] sm:$0xff] }
  0x3c   :  { %v295_v36 = vadd.f32 %v291_v18, %v244_v37  ;;  %v296_v21 = vadd.f32 %v292_v4, %v245_v41  ;;  %v297_v22 = vadd.f32 %v293_v9, %v246_v42  ;;  %v325_v26 = vmul.f32 %v951_v60, %v309_v10  ;;  %v960_v37 = vld [vmem:[%s1558_s0 + $0xe8] sm:$0xff] }
  0x3d   :  { %v329_v30 = vmul.f32 %v955_v57, %v313_v11  ;;  %v288_v31 = vadd.f32 %v284_v8, %v237_v44  ;;  %v289_v25 = vadd.f32 %v285_v12, %v238_v45  ;;  %v326_v32 = vmul.f32 %v952_v3, %v310_v13  ;;  %v961_v44 = vld [vmem:[%s1558_s0 + $0xf0] sm:$0xff]  ;;  %v962_v45 = vld [vmem:[%s1558_s0 + $0xf8] sm:$0xff] }
  0x3e   :  { %v330_v38 = vmul.f32 %v956_v46, %v314_v14  ;;  %v327_v39 = vmul.f32 %v953_v5, %v311_v19  ;;  %v328_v48 = vmul.f32 %v954_v7, %v312_v27  ;;  %v331_v47 = vmul.f32 %v957_v20, %v315_v33 }
  0x3f   :  { %v332_v50 = vmul.f32 %v958_v23, %v316_v34  ;;  %v317_v29 = vadd.f32 %v309_v10, %v266_v53  ;;  %v318_v49 = vadd.f32 %v310_v13, %v267_v54  ;;  %v319_v51 = vadd.f32 %v311_v19, %v268_v58  ;;  %v963_v53 = vld [vmem:[%s1559_s1 + $0xe0] sm:$0xff] }
  0x40   :  { %v320_v52 = vadd.f32 %v312_v27, %v269_v59  ;;  %v321_v41 = vadd.f32 %v313_v11, %v270_v61  ;;  %v322_v42 = vadd.f32 %v314_v14, %v271_v62  ;;  %v333_v40 = vadd.f32 %v329_v30, %v325_v26  ;;  %v964_v59 = vld [vmem:[%s1559_s1 + $0xe8] sm:$0xff] }
  0x41   :  { %v341_v43 = vmul.f32 %v955_v57, %v309_v10  ;;  %v334_v54 = vadd.f32 %v330_v38, %v326_v32  ;;  %v342_v55 = vmul.f32 %v956_v46, %v310_v13  ;;  %v343_v56 = vmul.f32 %v957_v20, %v311_v19 }
  0x42   :  { %v344_v58 = vmul.f32 %v958_v23, %v312_v27  ;;  %v335_v60 = vadd.f32 %v331_v47, %v327_v39  ;;  %v336_v57 = vadd.f32 %v332_v50, %v328_v48  ;;  %v360_v61 = vmul.f32 0.070648186, %v959_v15 }
  0x43   :  { %v361_v62 = vmul.f32 0.070648186, %v960_v37  ;;  %v323_v0 = vadd.f32 %v315_v33, %v1211_v63  ;;  %v362_v3 = vmul.f32 0.070648186, %v961_v44  ;;  %v363_v5 = vmul.f32 0.070648186, %v962_v45 }
  0x44   :  { %v364_v46 = vmul.f32 0.070648186, %v963_v53  ;;  %v324_v6 = vadd.f32 %v316_v34, %v273_v24  ;;  %v365_v16 = vmul.f32 0.070648186, %v964_v59  ;;  %v366_v18 = vmul.f32 0.070648186, %v965_v1 }
  0x45   :  { %v367_v4 = vmul.f32 0.070648186, %v966_v2  ;;  %v337_v7 = vadd.f32 %v333_v40, %v286_v17  ;;  %v345_v20 = vadd.f32 %v341_v43, %v294_v35  ;;  %v346_v23 = vadd.f32 %v342_v55, %v295_v36  ;;  %v967_v17 = vld [vmem:[%s1558_s0 + $0x100] sm:$0xff] }
  0x46   :  { %v347_v8 = vadd.f32 %v343_v56, %v296_v21  ;;  %v338_v9 = vadd.f32 %v334_v54, %v287_v28  ;;  %v339_v10 = vadd.f32 %v335_v60, %v288_v31  ;;  %v340_v11 = vadd.f32 %v336_v57, %v289_v25  ;;  %v971_v31 = vld [vmem:[%s1559_s1 + $0x100] sm:$0xff]  ;;  %v972_v25 = vld [vmem:[%s1559_s1 + $0x108] sm:$0xff] }
  0x47   :  { %v348_v12 = vadd.f32 %v344_v58, %v297_v22  ;;  %v376_v13 = vmul.f32 %v959_v15, %v360_v61  ;;  %v377_v19 = vmul.f32 %v960_v37, %v361_v62  ;;  %v378_v14 = vmul.f32 %v961_v44, %v362_v3  ;;  %v968_v22 = vld [vmem:[%s1558_s0 + $0x108] sm:$0xff]  ;;  %v970_v37 = vld [vmem:[%s1558_s0 + $0x118] sm:$0xff] }
  0x48   :  { %v380_v27 = vmul.f32 %v963_v53, %v364_v46  ;;  %v379_v63 = vmul.f32 %v962_v45, %v363_v5  ;;  %v381_v33 = vmul.f32 %v964_v59, %v365_v16  ;;  %v382_v26 = vmul.f32 %v965_v1, %v366_v18 }
  0x49   :  { %v383_v30 = vmul.f32 %v966_v2, %v367_v4  ;;  %v368_v24 = vadd.f32 %v360_v61, %v317_v29  ;;  %v369_v34 = vadd.f32 %v361_v62, %v318_v49  ;;  %v370_v32 = vadd.f32 %v362_v3, %v319_v51  ;;  %v969_v29 = vld [vmem:[%s1558_s0 + $0x110] sm:$0xff] }
  0x4a   :  { %v371_v38 = vadd.f32 %v363_v5, %v320_v52  ;;  %v372_v28 = vadd.f32 %v364_v46, %v321_v41  ;;  %v373_v35 = vadd.f32 %v365_v16, %v322_v42  ;;  %v392_v36 = vmul.f32 %v963_v53, %v360_v61  ;;  %v973_v49 = vld [vmem:[%s1559_s1 + $0x110] sm:$0xff]  ;;  %v974_v41 = vld [vmem:[%s1559_s1 + $0x118] sm:$0xff] }
  0x4b   :  { %v393_v21 = vmul.f32 %v964_v59, %v361_v62  ;;  %v374_v39 = vadd.f32 %v366_v18, %v323_v0  ;;  %v384_v48 = vadd.f32 %v380_v27, %v376_v13  ;;  %v394_v47 = vmul.f32 %v965_v1, %v362_v3  ;;  %v977_v27 = vld [vmem:[%s1558_s0 + $0x130] sm:$0xff] }
  0x4c   :  { %v395_v50 = vmul.f32 %v966_v2, %v363_v5  ;;  %v385_v51 = vadd.f32 %v381_v33, %v377_v19  ;;  %v386_v52 = vadd.f32 %v382_v26, %v378_v14  ;;  %v387_v15 = vadd.f32 %v383_v30, %v379_v63  ;;  %v976_v14 = vld [vmem:[%s1558_s0 + $0x128] sm:$0xff] }
  0x4d   :  { %v411_v42 = vmul.f32 0.04529823, %v967_v17  ;;  %v375_v40 = vadd.f32 %v367_v4, %v324_v6  ;;  %v412_v43 = vmul.f32 0.04529823, %v968_v22  ;;  %v415_v44 = vmul.f32 0.04529823, %v971_v31 }
  0x4e   :  { %v416_v45 = vmul.f32 0.04529823, %v972_v25  ;;  %v396_v53 = vadd.f32 %v392_v36, %v345_v20  ;;  %v397_v54 = vadd.f32 %v393_v21, %v346_v23  ;;  %v413_v55 = vmul.f32 0.04529823, %v969_v29  ;;  %v980_v63 = vld [vmem:[%s1559_s1 + $0x128] sm:$0xff] }
  0x4f   :  { %v417_v56 = vmul.f32 0.04529823, %v973_v49  ;;  %v398_v58 = vadd.f32 %v394_v47, %v347_v8  ;;  %v399_v59 = vadd.f32 %v395_v50, %v348_v12  ;;  %v414_v1 = vmul.f32 0.04529823, %v970_v37  ;;  %v975_v8 = vld [vmem:[%s1558_s0 + $0x120] sm:$0xff] }
  0x50   :  { %v418_v2 = vmul.f32 0.04529823, %v974_v41  ;;  %v388_v60 = vadd.f32 %v384_v48, %v337_v7  ;;  %v389_v57 = vadd.f32 %v385_v51, %v338_v9  ;;  %v390_v61 = vadd.f32 %v386_v52, %v339_v10  ;;  %v979_v7 = vld [vmem:[%s1559_s1 + $0x120] sm:$0xff] }
  0x51   :  { %v391_v62 = vadd.f32 %v387_v15, %v340_v11  ;;  %v427_v0 = vmul.f32 %v967_v17, %v411_v42  ;;  %v428_v3 = vmul.f32 %v968_v22, %v412_v43  ;;  %v431_v5 = vmul.f32 %v971_v31, %v415_v44 }
  0x52   :  { %v432_v46 = vmul.f32 %v972_v25, %v416_v45  ;;  %v419_v6 = vadd.f32 %v411_v42, %v368_v24  ;;  %v420_v16 = vadd.f32 %v412_v43, %v369_v34  ;;  %v429_v18 = vmul.f32 %v969_v29, %v413_v55  ;;  %v978_v34 = vld [vmem:[%s1558_s0 + $0x138] sm:$0xff] }
  0x53   :  { %v433_v4 = vmul.f32 %v973_v49, %v417_v56  ;;  %v421_v20 = vadd.f32 %v413_v55, %v370_v32  ;;  %v422_v23 = vadd.f32 %v414_v1, %v371_v38  ;;  %v430_v13 = vmul.f32 %v970_v37, %v414_v1  ;;  %v981_v32 = vld [vmem:[%s1559_s1 + $0x130] sm:$0xff]  ;;  %v982_v38 = vld [vmem:[%s1559_s1 + $0x138] sm:$0xff] }
  0x54   :  { %v434_v19 = vmul.f32 %v974_v41, %v418_v2  ;;  %v423_v9 = vadd.f32 %v415_v44, %v372_v28  ;;  %v424_v10 = vadd.f32 %v416_v45, %v373_v35  ;;  %v1286_v11 = vadd.f32 %v417_v56, %v374_v39 }
  0x55   :  { %v443_v12 = vmul.f32 %v971_v31, %v411_v42  ;;  %v435_v33 = vadd.f32 %v431_v5, %v427_v0  ;;  %v436_v26 = vadd.f32 %v432_v46, %v428_v3  ;;  %v444_v30 = vmul.f32 %v972_v25, %v412_v43 }
  0x56   :  { %v445_v24 = vmul.f32 %v973_v49, %v413_v55  ;;  %v437_v17 = vadd.f32 %v433_v4, %v429_v18  ;;  %v446_v28 = vmul.f32 %v974_v41, %v414_v1  ;;  %v462_v35 = vmul.f32 0.0882289, %v975_v8 }
  0x57   :  { %v466_v36 = vmul.f32 0.0882289, %v979_v7  ;;  %v438_v21 = vadd.f32 %v434_v19, %v430_v13  ;;  %v463_v22 = vmul.f32 0.0882289, %v976_v14  ;;  %v464_v31 = vmul.f32 0.0882289, %v977_v27 }
  0x58   :  { %v467_v25 = vmul.f32 0.0882289, %v980_v63  ;;  %v426_v39 = vadd.f32 %v418_v2, %v375_v40  ;;  %v465_v48 = vmul.f32 0.0882289, %v978_v34  ;;  %v468_v47 = vmul.f32 0.0882289, %v981_v32 }
  0x59   :  { %v469_v50 = vmul.f32 0.0882289, %v982_v38  ;;  %v439_v29 = vadd.f32 %v435_v33, %v388_v60  ;;  %v440_v49 = vadd.f32 %v436_v26, %v389_v57  ;;  %v447_v51 = vadd.f32 %v443_v12, %v396_v53  ;;  %v983_v53 = vld [vmem:[%s1558_s0 + $0x140] sm:$0xff]  ;;  %v989_v13 = vld [vmem:[%s1559_s1 + $0x150] sm:$0xff]  ;;  %v990_v19 = vld [vmem:[%s1559_s1 + $0x158] sm:$0xff] }
  0x5a   :  { %v448_v52 = vadd.f32 %v444_v30, %v397_v54  ;;  %v449_v15 = vadd.f32 %v445_v24, %v398_v58  ;;  %v450_v37 = vadd.f32 %v446_v28, %v399_v59  ;;  %v478_v42 = vmul.f32 %v975_v8, %v462_v35  ;;  %v984_v54 = vld [vmem:[%s1558_s0 + $0x148] sm:$0xff] }
  0x5b   :  { %v482_v43 = vmul.f32 %v979_v7, %v466_v36  ;;  %v441_v44 = vadd.f32 %v437_v17, %v390_v61  ;;  %v442_v41 = vadd.f32 %v438_v21, %v391_v62  ;;  %v479_v45 = vmul.f32 %v976_v14, %v463_v22  ;;  %v985_v61 = vld [vmem:[%s1558_s0 + $0x150] sm:$0xff]  ;;  %v986_v62 = vld [vmem:[%s1558_s0 + $0x158] sm:$0xff] }
  0x5c   :  { %v483_v55 = vmul.f32 %v980_v63, %v467_v25  ;;  %v480_v56 = vmul.f32 %v977_v27, %v464_v31  ;;  %v481_v1 = vmul.f32 %v978_v34, %v465_v48  ;;  %v484_v0 = vmul.f32 %v981_v32, %v468_v47 }
  0x5d   :  { %v485_v3 = vmul.f32 %v982_v38, %v469_v50  ;;  %v470_v40 = vadd.f32 %v462_v35, %v419_v6  ;;  %v471_v2 = vadd.f32 %v463_v22, %v420_v16  ;;  %v472_v5 = vadd.f32 %v464_v31, %v421_v20  ;;  %v987_v6 = vld [vmem:[%s1559_s1 + $0x140] sm:$0xff] }
  0x5e   :  { %v473_v46 = vadd.f32 %v465_v48, %v422_v23  ;;  %v474_v58 = vadd.f32 %v466_v36, %v423_v9  ;;  %v475_v59 = vadd.f32 %v467_v25, %v424_v10  ;;  %v486_v60 = vadd.f32 %v482_v43, %v478_v42  ;;  %v988_v23 = vld [vmem:[%s1559_s1 + $0x148] sm:$0xff] }
  0x5f   :  { %v494_v57 = vmul.f32 %v979_v7, %v462_v35  ;;  %v487_v16 = vadd.f32 %v483_v55, %v479_v45  ;;  %v495_v18 = vmul.f32 %v980_v63, %v463_v22  ;;  %v496_v4 = vmul.f32 %v981_v32, %v464_v31 }
  0x60   :  { %v497_v20 = vmul.f32 %v982_v38, %v465_v48  ;;  %v488_v8 = vadd.f32 %v484_v0, %v480_v56  ;;  %v489_v7 = vadd.f32 %v485_v3, %v481_v1  ;;  %v513_v9 = vmul.f32 0.110184565, %v983_v53 }
  0x61   :  { %v514_v10 = vmul.f32 0.110184565, %v984_v54  ;;  %v476_v12 = vadd.f32 %v468_v47, %v1286_v11  ;;  %v515_v14 = vmul.f32 0.110184565, %v985_v61  ;;  %v516_v27 = vmul.f32 0.110184565, %v986_v62 }
  0x62   :  { %v517_v63 = vmul.f32 0.110184565, %v987_v6  ;;  %v477_v33 = vadd.f32 %v469_v50, %v426_v39  ;;  %v518_v26 = vmul.f32 0.110184565, %v988_v23  ;;  %v519_v30 = vmul.f32 0.110184565, %v989_v13 }
  0x63   :  { %v520_v24 = vmul.f32 0.110184565, %v990_v19  ;;  %v490_v34 = vadd.f32 %v486_v60, %v439_v29  ;;  %v498_v32 = vadd.f32 %v494_v57, %v447_v51  ;;  %v499_v38 = vadd.f32 %v495_v18, %v448_v52  ;;  %v991_v29 = vld [vmem:[%s1558_s0 + $0x160] sm:$0xff] }
  0x64   :  { %v500_v17 = vadd.f32 %v496_v4, %v449_v15  ;;  %v491_v28 = vadd.f32 %v487_v16, %v440_v49  ;;  %v492_v35 = vadd.f32 %v488_v8, %v441_v44  ;;  %v493_v36 = vadd.f32 %v489_v7, %v442_v41  ;;  %v995_v44 = vld [vmem:[%s1559_s1 + $0x160] sm:$0xff]  ;;  %v996_v41 = vld [vmem:[%s1559_s1 + $0x168] sm:$0xff] }
  0x65   :  { %v501_v21 = vadd.f32 %v497_v20, %v450_v37  ;;  %v529_v22 = vmul.f32 %v983_v53, %v513_v9  ;;  %v530_v31 = vmul.f32 %v984_v54, %v514_v10  ;;  %v531_v25 = vmul.f32 %v985_v61, %v515_v14  ;;  %v992_v37 = vld [vmem:[%s1558_s0 + $0x168] sm:$0xff]  ;;  %v994_v53 = vld [vmem:[%s1558_s0 + $0x178] sm:$0xff]  ;;  %v997_v54 = vld [vmem:[%s1559_s1 + $0x170] sm:$0xff] }
  0x66   :  { %v533_v48 = vmul.f32 %v987_v6, %v517_v63  ;;  %v532_v11 = vmul.f32 %v986_v62, %v516_v27  ;;  %v534_v47 = vmul.f32 %v988_v23, %v518_v26  ;;  %v535_v42 = vmul.f32 %v989_v13, %v519_v30 }
  0x67   :  { %v536_v43 = vmul.f32 %v990_v19, %v520_v24  ;;  %v521_v39 = vadd.f32 %v513_v9, %v470_v40  ;;  %v522_v50 = vadd.f32 %v514_v10, %v471_v2  ;;  %v523_v45 = vadd.f32 %v515_v14, %v472_v5  ;;  %v993_v40 = vld [vmem:[%s1558_s0 + $0x170] sm:$0xff] }
  0x68   :  { %v524_v55 = vadd.f32 %v516_v27, %v473_v46  ;;  %v525_v49 = vadd.f32 %v517_v63, %v474_v58  ;;  %v545_v51 = vmul.f32 %v987_v6, %v513_v9  ;;  %v546_v52 = vmul.f32 %v988_v23, %v514_v10  ;;  %v998_v58 = vld [vmem:[%s1559_s1 + $0x178] sm:$0xff] }
  0x69   :  { %v547_v15 = vmul.f32 %v989_v13, %v515_v14  ;;  %v526_v56 = vadd.f32 %v518_v26, %v475_v59  ;;  %v527_v1 = vadd.f32 %v519_v30, %v476_v12  ;;  %v537_v0 = vadd.f32 %v533_v48, %v529_v22 }
  0x6a   :  { %v548_v3 = vmul.f32 %v990_v19, %v516_v27  ;;  %v538_v2 = vadd.f32 %v534_v47, %v530_v31  ;;  %v539_v5 = vadd.f32 %v535_v42, %v531_v25  ;;  %v540_v46 = vadd.f32 %v536_v43, %v532_v11  ;;  %v1000_v25 = vld [vmem:[%s1558_s0 + $0x188] sm:$0xff]  ;;  %v1001_v43 = vld [vmem:[%s1558_s0 + $0x190] sm:$0xff] }
  0x6b   :  { %v564_v59 = vmul.f32 0.0882289, %v991_v29  ;;  %v528_v60 = vadd.f32 %v520_v24, %v477_v33  ;;  %v565_v57 = vmul.f32 0.0882289, %v992_v37  ;;  %v568_v61 = vmul.f32 0.0882289, %v995_v44 }
  0x6c   :  { %v569_v62 = vmul.f32 0.0882289, %v996_v41  ;;  %v549_v6 = vadd.f32 %v545_v51, %v498_v32  ;;  %v550_v16 = vadd.f32 %v546_v52, %v499_v38  ;;  %v551_v18 = vadd.f32 %v547_v15, %v500_v17 }
  0x6d   :  { %v566_v4 = vmul.f32 0.0882289, %v993_v40  ;;  %v552_v20 = vadd.f32 %v548_v3, %v501_v21  ;;  %v567_v23 = vmul.f32 0.0882289, %v994_v53  ;;  %v570_v13 = vmul.f32 0.0882289, %v997_v54 }
  0x6e   :  { %v571_v19 = vmul.f32 0.0882289, %v998_v58  ;;  %v541_v8 = vadd.f32 %v537_v0, %v490_v34  ;;  %v542_v7 = vadd.f32 %v538_v2, %v491_v28  ;;  %v543_v9 = vadd.f32 %v539_v5, %v492_v35  ;;  %v999_v21 = vld [vmem:[%s1558_s0 + $0x180] sm:$0xff] }
  0x6f   :  { %v544_v10 = vadd.f32 %v540_v46, %v493_v36  ;;  %v580_v12 = vmul.f32 %v991_v29, %v564_v59  ;;  %v581_v14 = vmul.f32 %v992_v37, %v565_v57  ;;  %v584_v27 = vmul.f32 %v995_v44, %v568_v61  ;;  %v1003_v34 = vld [vmem:[%s1559_s1 + $0x180] sm:$0xff]  ;;  %v1005_v37 = vld [vmem:[%s1559_s1 + $0x190] sm:$0xff] }
  0x70   :  { %v585_v63 = vmul.f32 %v996_v41, %v569_v62  ;;  %v572_v33 = vadd.f32 %v564_v59, %v521_v39  ;;  %v573_v26 = vadd.f32 %v565_v57, %v522_v50  ;;  %v574_v30 = vadd.f32 %v566_v4, %v523_v45  ;;  %v1002_v39 = vld [vmem:[%s1558_s0 + $0x198] sm:$0xff]  ;;  %v1004_v50 = vld [vmem:[%s1559_s1 + $0x188] sm:$0xff] }
  0x71   :  { %v582_v24 = vmul.f32 %v993_v40, %v566_v4  ;;  %v583_v32 = vmul.f32 %v994_v53, %v567_v23  ;;  %v586_v38 = vmul.f32 %v997_v54, %v570_v13  ;;  %v587_v17 = vmul.f32 %v998_v58, %v571_v19 }
  0x72   :  { %v596_v22 = vmul.f32 %v995_v44, %v564_v59  ;;  %v575_v28 = vadd.f32 %v567_v23, %v524_v55  ;;  %v576_v35 = vadd.f32 %v568_v61, %v525_v49  ;;  %v577_v36 = vadd.f32 %v569_v62, %v526_v56  ;;  %v1006_v44 = vld [vmem:[%s1559_s1 + $0x198] sm:$0xff] }
  0x73   :  { %v597_v31 = vmul.f32 %v996_v41, %v565_v57  ;;  %v588_v48 = vadd.f32 %v584_v27, %v580_v12  ;;  %v589_v11 = vadd.f32 %v585_v63, %v581_v14  ;;  %v598_v47 = vmul.f32 %v997_v54, %v566_v4  ;;  %v1011_v12 = vld [vmem:[%s1559_s1 + $0x1a0] sm:$0xff] }
  0x74   :  { %v599_v42 = vmul.f32 %v998_v58, %v567_v23  ;;  %v578_v45 = vadd.f32 %v570_v13, %v527_v1  ;;  %v579_v55 = vadd.f32 %v571_v19, %v528_v60  ;;  %v615_v29 = vmul.f32 0.036271986, %v999_v21 }
  0x75   :  { %v619_v49 = vmul.f32 0.036271986, %v1003_v34  ;;  %v590_v51 = vadd.f32 %v586_v38, %v582_v24  ;;  %v591_v52 = vadd.f32 %v587_v17, %v583_v32  ;;  %v600_v15 = vadd.f32 %v596_v22, %v549_v6  ;;  %v1014_v24 = vld [vmem:[%s1559_s1 + $0x1b8] sm:$0xff] }
  0x76   :  { %v616_v41 = vmul.f32 0.036271986, %v1000_v25  ;;  %v601_v56 = vadd.f32 %v597_v31, %v550_v16  ;;  %v617_v0 = vmul.f32 0.036271986, %v1001_v43  ;;  %v618_v3 = vmul.f32 0.036271986, %v1002_v39 }
  0x77   :  { %v620_v40 = vmul.f32 0.036271986, %v1004_v50  ;;  %v592_v1 = vadd.f32 %v588_v48, %v541_v8  ;;  %v593_v2 = vadd.f32 %v589_v11, %v542_v7  ;;  %v602_v5 = vadd.f32 %v598_v47, %v551_v18  ;;  %v1007_v16 = vld [vmem:[%s1558_s0 + $0x1a0] sm:$0xff]  ;;  %v1008_v18 = vld [vmem:[%s1558_s0 + $0x1a8] sm:$0xff] }
  0x78   :  { %v603_v46 = vadd.f32 %v599_v42, %v552_v20  ;;  %v621_v53 = vmul.f32 0.036271986, %v1005_v37  ;;  %v622_v54 = vmul.f32 0.036271986, %v1006_v44  ;;  %v631_v58 = vmul.f32 %v999_v21, %v615_v29 }
  0x79   :  { %v635_v59 = vmul.f32 %v1003_v34, %v619_v49  ;;  %v594_v60 = vadd.f32 %v590_v51, %v543_v9  ;;  %v595_v57 = vadd.f32 %v591_v52, %v544_v10  ;;  %v623_v61 = vadd.f32 %v615_v29, %v572_v33  ;;  %v1009_v9 = vld [vmem:[%s1558_s0 + $0x1b0] sm:$0xff]  ;;  %v1010_v10 = vld [vmem:[%s1558_s0 + $0x1b8] sm:$0xff] }
  0x7a   :  { %v624_v62 = vadd.f32 %v616_v41, %v573_v26  ;;  %v625_v6 = vadd.f32 %v617_v0, %v574_v30  ;;  %v626_v4 = vadd.f32 %v618_v3, %v575_v28  ;;  %v627_v23 = vadd.f32 %v619_v49, %v576_v35  ;;  %v1012_v26 = vld [vmem:[%s1559_s1 + $0x1a8] sm:$0xff]  ;;  %v1013_v30 = vld [vmem:[%s1559_s1 + $0x1b0] sm:$0xff] }
  0x7b   :  { %v628_v13 = vadd.f32 %v620_v40, %v577_v36  ;;  %v632_v20 = vmul.f32 %v1000_v25, %v616_v41  ;;  %v633_v19 = vmul.f32 %v1001_v43, %v617_v0  ;;  %v634_v8 = vmul.f32 %v1002_v39, %v618_v3 }
  0x7c   :  { %v636_v7 = vmul.f32 %v1004_v50, %v620_v40  ;;  %v637_v14 = vmul.f32 %v1005_v37, %v621_v53  ;;  %v638_v27 = vmul.f32 %v1006_v44, %v622_v54  ;;  %v639_v63 = vadd.f32 %v635_v59, %v631_v58 }
  0x7d   :  { %v647_v33 = vmul.f32 %v1003_v34, %v615_v29  ;;  %v648_v32 = vmul.f32 %v1004_v50, %v616_v41  ;;  %v649_v38 = vmul.f32 %v1005_v37, %v617_v0  ;;  %v666_v17 = vmul.f32 0.070648186, %v1007_v16 }
  0x7e   :  { %v667_v22 = vmul.f32 0.070648186, %v1008_v18  ;;  %v629_v21 = vadd.f32 %v621_v53, %v578_v45  ;;  %v668_v28 = vmul.f32 0.070648186, %v1009_v9  ;;  %v669_v35 = vmul.f32 0.070648186, %v1010_v10 }
  0x7f   :  { %v670_v34 = vmul.f32 0.070648186, %v1011_v12  ;;  %v630_v36 = vadd.f32 %v622_v54, %v579_v55  ;;  %v671_v31 = vmul.f32 0.070648186, %v1012_v26  ;;  %v672_v25 = vmul.f32 0.070648186, %v1013_v30 }
  0x80   :  { %v673_v48 = vmul.f32 0.070648186, %v1014_v24  ;;  %v640_v11 = vadd.f32 %v636_v7, %v632_v20  ;;  %v641_v47 = vadd.f32 %v637_v14, %v633_v19  ;;  %v642_v42 = vadd.f32 %v638_v27, %v634_v8  ;;  %v1436_v20 = vld [vmem:[%s1559_s1 + $0x1d0] sm:$0xff]  ;;  %v1441_v19 = vld [vmem:[%s1559_s1 + $0x1d8] sm:$0xff] }
  0x81   :  { %v650_v43 = vmul.f32 %v1006_v44, %v618_v3  ;;  %v643_v39 = vadd.f32 %v639_v63, %v592_v1  ;;  %v1403_v29 = vadd.f32 %v647_v33, %v600_v15  ;;  %v1405_v49 = vadd.f32 %v648_v32, %v601_v56  ;;  %v1015_v1 = vld [vmem:[%s1558_s0 + $0x1c0] sm:$0xff]  ;;  %1569 = vst [vmem:[#allocation3_spill] sm:$0xff] %v1436_v20 }
  0x82   :  { %v1407_v50 = vadd.f32 %v649_v38, %v602_v5  ;;  %v682_v51 = vmul.f32 %v1007_v16, %v666_v17  ;;  %v683_v45 = vmul.f32 %v1008_v18, %v667_v22  ;;  %v684_v52 = vmul.f32 %v1009_v9, %v668_v28  ;;  %v1016_v5 = vld [vmem:[%s1558_s0 + $0x1c8] sm:$0xff]  ;;  %1570 = vst [vmem:[#allocation4_spill] sm:$0xff] %v1441_v19 }
  0x83   :  { %v685_v37 = vmul.f32 %v1010_v10, %v669_v35  ;;  %v686_v41 = vmul.f32 %v1011_v12, %v670_v34  ;;  %v687_v55 = vmul.f32 %v1012_v26, %v671_v31  ;;  %v688_v0 = vmul.f32 %v1013_v30, %v672_v25 }
  0x84   :  { %v689_v40 = vmul.f32 %v1014_v24, %v673_v48  ;;  %v644_v53 = vadd.f32 %v640_v11, %v593_v2  ;;  %v645_v54 = vadd.f32 %v641_v47, %v594_v60  ;;  %v646_v58 = vadd.f32 %v642_v42, %v595_v57  ;;  %v1017_v2 = vld [vmem:[%s1558_s0 + $0x1d0] sm:$0xff]  ;;  %v1482_v11 = vld [vmem:[%s1559_s1 + $0x1e0] sm:$0xff] }
  0x85   :  { %v1409_v59 = vadd.f32 %v650_v43, %v603_v46  ;;  %v674_v44 = vadd.f32 %v666_v17, %v623_v61  ;;  %v675_v15 = vadd.f32 %v667_v22, %v624_v62  ;;  %v676_v3 = vadd.f32 %v668_v28, %v625_v6  ;;  %v1018_v61 = vld [vmem:[%s1558_s0 + $0x1d8] sm:$0xff]  ;;  %v1426_v62 = vld [vmem:[%s1559_s1 + $0x1c0] sm:$0xff]  ;;  %v1431_v6 = vld [vmem:[%s1559_s1 + $0x1c8] sm:$0xff] }
  0x86   :  { %v677_v56 = vadd.f32 %v669_v35, %v626_v4  ;;  %v678_v60 = vadd.f32 %v670_v34, %v627_v23  ;;  %v679_v57 = vadd.f32 %v671_v31, %v628_v13  ;;  %v680_v46 = vadd.f32 %v672_v25, %v629_v21  ;;  %1568 = vst [vmem:[#allocation2_spill] sm:$0xff] %v1431_v6  ;;  %v1025_v25 = vld [vmem:[%s1558_s0 + $0x1f0] sm:$0xff] }
  0x87   :  { %v681_v16 = vadd.f32 %v673_v48, %v630_v36  ;;  %v690_v4 = vadd.f32 %v686_v41, %v682_v51  ;;  %v691_v18 = vadd.f32 %v687_v55, %v683_v45  ;;  %v692_v23 = vadd.f32 %v688_v0, %v684_v52  ;;  %v1026_v48 = vld [vmem:[%s1558_s0 + $0x1f8] sm:$0xff]  ;;  %v1491_v51 = vld [vmem:[%s1559_s1 + $0x1e8] sm:$0xff]  ;;  %v1496_v45 = vld [vmem:[%s1559_s1 + $0x1f0] sm:$0xff] }
  0x88   :  { %v693_v13 = vadd.f32 %v689_v40, %v685_v37  ;;  %v1443_v8 = vmul.f32 %v1011_v12, %v666_v17  ;;  %v1445_v7 = vmul.f32 0.0882289, %v1015_v1  ;;  %v1447_v9 = vmul.f32 0.0882289, %v1016_v5  ;;  %v1501_v52 = vld [vmem:[%s1559_s1 + $0x1f8] sm:$0xff] }
  0x89   :  { %v1449_v10 = vmul.f32 0.0882289, %v1017_v2  ;;  %v1451_v14 = vmul.f32 %v1012_v26, %v667_v22  ;;  %v1453_v27 = vmul.f32 0.0882289, %v1018_v61  ;;  %v721_v63 = vmul.f32 0.0882289, %v1426_v62 }
  0x8a   :  { %1571 = vst [vmem:[#allocation5_spill] sm:$0xff] %v1447_v9  ;;  %v722_v33 = vmul.f32 0.0882289, %v1431_v6  ;;  %v1457_v32 = vmul.f32 %v1013_v30, %v668_v28  ;;  %v1459_v38 = vmul.f32 %v1014_v24, %v669_v35  ;;  %v723_v12 = vmul.f32 0.0882289, %v1436_v20  ;;  %v1023_v26 = vld [vmem:[%s1558_s0 + $0x1e0] sm:$0xff] }
  0x8b   :  { %1572 = vst [vmem:[#allocation6_spill] sm:$0xff] %v1449_v10  ;;  %1573 = vst [vmem:[#allocation7_spill] sm:$0xff] %v1453_v27  ;;  %v724_v17 = vmul.f32 0.0882289, %v1441_v19  ;;  %v694_v21 = vadd.f32 %v690_v4, %v643_v39  ;;  %v695_v34 = vadd.f32 %v691_v18, %v644_v53  ;;  %v696_v36 = vadd.f32 %v692_v23, %v645_v54  ;;  %v1024_v22 = vld [vmem:[%s1558_s0 + $0x1e8] sm:$0xff] }
  0x8c   :  { %v697_v31 = vadd.f32 %v693_v13, %v646_v58  ;;  %v725_v30 = vadd.f32 %v1445_v7, %v674_v44  ;;  %v726_v24 = vadd.f32 %v1447_v9, %v675_v15  ;;  %v733_v28 = vmul.f32 %v1015_v1, %v1445_v7  ;;  %1574 = vst [vmem:[#allocation8_spill] sm:$0xff] %v1501_v52 }
  0x8d   :  { %v734_v35 = vmul.f32 %v1016_v5, %v1447_v9  ;;  %v735_v47 = vmul.f32 %v1017_v2, %v1449_v10  ;;  %v736_v42 = vmul.f32 %v1018_v61, %v1453_v27  ;;  %v737_v43 = vmul.f32 %v1426_v62, %v721_v63 }
  0x8e   :  { %v738_v39 = vmul.f32 %v1431_v6, %v722_v33  ;;  %v739_v37 = vmul.f32 %v1436_v20, %v723_v12  ;;  %v740_v41 = vmul.f32 %v1441_v19, %v724_v17  ;;  %v1505_v55 = vmul.f32 0.070648186, %v1023_v26 }
  0x8f   :  { %v1507_v0 = vmul.f32 0.070648186, %v1024_v22  ;;  %v727_v40 = vadd.f32 %v1449_v10, %v676_v3  ;;  %v1510_v53 = vmul.f32 0.070648186, %v1025_v25  ;;  %v1512_v54 = vmul.f32 0.070648186, %v1026_v48 }
  0x90   :  { %v772_v58 = vmul.f32 0.070648186, %v1482_v11  ;;  %v728_v44 = vadd.f32 %v1453_v27, %v677_v56  ;;  %v773_v15 = vmul.f32 0.070648186, %v1491_v51  ;;  %v774_v1 = vmul.f32 0.070648186, %v1496_v45 }
  0x91   :  { %v775_v5 = vmul.f32 0.070648186, %v1501_v52  ;;  %v729_v2 = vadd.f32 %v721_v63, %v678_v60  ;;  %v730_v61 = vadd.f32 %v722_v33, %v679_v57  ;;  %v731_v4 = vadd.f32 %v723_v12, %v680_v46 }
  0x92   :  { %v732_v18 = vadd.f32 %v724_v17, %v681_v16  ;;  %v741_v23 = vadd.f32 %v737_v43, %v733_v28  ;;  %v742_v3 = vadd.f32 %v738_v39, %v734_v35  ;;  %v743_v13 = vadd.f32 %v739_v37, %v735_v47 }
  0x93   :  { %v744_v19 = vadd.f32 %v740_v41, %v736_v42  ;;  %v784_v20 = vmul.f32 %v1023_v26, %v1505_v55  ;;  %v785_v10 = vmul.f32 %v1024_v22, %v1507_v0  ;;  %v786_v56 = vmul.f32 %v1025_v25, %v1510_v53 }
  0x94   :  { %v787_v27 = vmul.f32 %v1026_v48, %v1512_v54  ;;  %v788_v6 = vmul.f32 %v1482_v11, %v772_v58  ;;  %v789_v9 = vmul.f32 %v1491_v51, %v773_v15  ;;  %v790_v60 = vmul.f32 %v1496_v45, %v774_v1 }
  0x95   :  { %v791_v57 = vmul.f32 %v1501_v52, %v775_v5  ;;  %v776_v46 = vadd.f32 %v1505_v55, %v725_v30  ;;  %v777_v16 = vadd.f32 %v1507_v0, %v726_v24  ;;  %v778_v63 = vadd.f32 %v1510_v53, %v727_v40 }
  0x96   :  { %v780_v33 = vadd.f32 %v772_v58, %v729_v2  ;;  %v779_v12 = vadd.f32 %v1512_v54, %v728_v44  ;;  %v781_v17 = vadd.f32 %v773_v15, %v730_v61  ;;  %v782_v26 = vadd.f32 %v774_v1, %v731_v4  ;;  %v1579_v15 = vld [vmem:[#allocation7_spill] sm:$0xff] }
  0x97   :  { %v783_v22 = vadd.f32 %v775_v5, %v732_v18  ;;  %v745_v28 = vadd.f32 %v741_v23, %v694_v21  ;;  %v746_v35 = vadd.f32 %v742_v3, %v695_v34  ;;  %v747_v25 = vadd.f32 %v743_v13, %v696_v36  ;;  %v1577_v34 = vld [vmem:[#allocation6_spill] sm:$0xff]  ;;  %v1578_v36 = vld [vmem:[#allocation3_spill] sm:$0xff] }
  0x98   :  { %v748_v48 = vadd.f32 %v744_v19, %v697_v31  ;;  %v792_v47 = vadd.f32 %v788_v6, %v784_v20  ;;  %v793_v42 = vadd.f32 %v789_v9, %v785_v10  ;;  %v794_v43 = vadd.f32 %v790_v60, %v786_v56  ;;  %v1575_v9 = vld [vmem:[#allocation5_spill] sm:$0xff]  ;;  %v1576_v10 = vld [vmem:[#allocation2_spill] sm:$0xff]  ;;  %v1581_v60 = vld [vmem:[#allocation8_spill] sm:$0xff] }
  0x99   :  { %v795_v39 = vadd.f32 %v791_v57, %v787_v27  ;;  %v808_v37 = vmul.f32 %v776_v46, %v776_v46  ;;  %v809_v30 = vmul.f32 %v777_v16, %v777_v16  ;;  %v810_v41 = vmul.f32 %v778_v63, %v778_v63 }
  0x9a   :  { %v812_v24 = vmul.f32 %v780_v33, %v780_v33  ;;  %v811_v52 = vmul.f32 %v779_v12, %v779_v12  ;;  %v813_v40 = vmul.f32 %v781_v17, %v781_v17  ;;  %v814_v58 = vmul.f32 %v782_v26, %v782_v26 }
  0x9b   :  { %v815_v2 = vmul.f32 %v783_v22, %v783_v22  ;;  %v702_v44 = vadd.f32 %v1443_v8, %v1403_v29  ;;  %v703_v21 = vadd.f32 %v1451_v14, %v1405_v49  ;;  %v704_v6 = vadd.f32 %v1457_v32, %v1407_v50  ;;  %v1580_v29 = vld [vmem:[#allocation4_spill] sm:$0xff] }
  0x9c   :  { %v749_v20 = vmul.f32 %v1426_v62, %v1445_v7  ;;  %v705_v19 = vadd.f32 %v1459_v38, %v1409_v59  ;;  %v750_v27 = vmul.f32 %v1576_v10, %v1575_v9  ;;  %v751_v31 = vmul.f32 %v1578_v36, %v1577_v34 }
  0x9d   :  { %v752_v8 = vmul.f32 %v1580_v29, %v1579_v15  ;;  %v796_v1 = vadd.f32 %v792_v47, %v745_v28  ;;  %v797_v49 = vadd.f32 %v793_v42, %v746_v35  ;;  %v820_v14 = vadd.f32 %v812_v24, %v808_v37 }
  0x9e   :  { %v821_v5 = vadd.f32 %v813_v40, %v809_v30  ;;  %v798_v50 = vadd.f32 %v794_v43, %v747_v25  ;;  %v799_v32 = vadd.f32 %v795_v39, %v748_v48  ;;  %v822_v61 = vadd.f32 %v814_v58, %v810_v41 }
  0x9f   :  { %v823_v62 = vadd.f32 %v815_v2, %v811_v52  ;;  %v753_v7 = vadd.f32 %v749_v20, %v702_v44  ;;  %v800_v59 = vmul.f32 %v1482_v11, %v1505_v55  ;;  %v754_v38 = vadd.f32 %v750_v27, %v703_v21 }
  0xa0   :  { %v755_v4 = vadd.f32 %v751_v31, %v704_v6  ;;  %v801_v18 = vmul.f32 %v1491_v51, %v1507_v0  ;;  %v802_v23 = vmul.f32 %v1496_v45, %v1510_v53  ;;  %v828_v3 = vsub.f32 %v796_v1, %v820_v14 }
  0xa1   :  { %v829_v13 = vsub.f32 %v797_v49, %v821_v5  ;;  %v756_v56 = vadd.f32 %v752_v8, %v705_v19  ;;  %v803_v57 = vmul.f32 %v1581_v60, %v1512_v54  ;;  %v830_v28 = vsub.f32 %v798_v50, %v822_v61 }
  0xa2   :  { %v831_v52 = vsub.f32 %v799_v32, %v823_v62  ;;  %v804_v35 = vadd.f32 %v800_v59, %v753_v7  ;;  %v816_v25 = vmul.f32 %v780_v33, %v776_v46  ;;  %v852_v48 = vadd.f32 0.0001, %v820_v14 }
  0xa3   :  { %v853_v11 = vadd.f32 0.0001, %v821_v5  ;;  %v805_v55 = vadd.f32 %v801_v18, %v754_v38  ;;  %v806_v47 = vadd.f32 %v802_v23, %v755_v4  ;;  %v817_v42 = vmul.f32 %v781_v17, %v777_v16 }
  0xa4   :  { %v854_v43 = vadd.f32 0.0001, %v822_v61  ;;  %v818_v51 = vmul.f32 %v782_v26, %v778_v63  ;;  %v855_v0 = vadd.f32 0.0001, %v823_v62  ;;  %v856_v39 = vadd.f32 0.0009, %v828_v3 }
  0xa5   :  { %v857_v45 = vadd.f32 0.0009, %v829_v13  ;;  %v807_v53 = vadd.f32 %v803_v57, %v756_v56  ;;  %v819_v37 = vmul.f32 %v783_v22, %v779_v12  ;;  %v858_v30 = vadd.f32 0.0009, %v830_v28 }
  0xa6   :  { %v859_v41 = vadd.f32 0.0009, %v831_v52  ;;  %v824_v24 = vsub.f32 %v804_v35, %v816_v25  ;;  %v860_v54 = vmul.f32 %v856_v39, %v852_v48  ;;  %v825_v58 = vsub.f32 %v805_v55, %v817_v42 }
  0xa7   :  { %v861_v40 = vmul.f32 %v857_v45, %v853_v11  ;;  %v862_v2 = vmul.f32 %v858_v30, %v854_v43  ;;  %v826_v33 = vsub.f32 %v806_v47, %v818_v51  ;;  %v827_v44 = vsub.f32 %v807_v53, %v819_v37 }
  0xa8   :  { %v863_v46 = vmul.f32 %v859_v41, %v855_v0  ;;  %1031 = vrcp.f32 %v860_v54  ;;  %v832_v16 = vmul.f32 2.0, %v816_v25  ;;  %v840_v17 = vmul.f32 2.0, %v824_v24 }
  0xa9   :  { %1033 = vrcp.f32 %v861_v40  ;;  %v833_v63 = vmul.f32 2.0, %v817_v42  ;;  %v841_v26 = vmul.f32 2.0, %v825_v58  ;;  %v834_v21 = vmul.f32 2.0, %v818_v51 }
  0xaa   :  { %1035 = vrcp.f32 %v862_v2  ;;  %v842_v12 = vmul.f32 2.0, %v826_v33  ;;  %v835_v22 = vmul.f32 2.0, %v819_v37  ;;  %v843_v6 = vmul.f32 2.0, %v827_v44 }
  0xab   :  { %1037 = vrcp.f32 %v863_v46  ;;  %v836_v20 = vadd.f32 0.0001, %v832_v16  ;;  %v844_v19 = vadd.f32 0.0009, %v840_v17  ;;  %v837_v9 = vadd.f32 0.0001, %v833_v63 }
  0xac   :  { %v845_v10 = vadd.f32 0.0009, %v841_v26  ;;  %v838_v27 = vadd.f32 0.0001, %v834_v21  ;;  %v846_v34 = vadd.f32 0.0009, %v842_v12 }
  0xad   :  { %v839_v36 = vadd.f32 0.0001, %v835_v22  ;;  %v847_v31 = vadd.f32 0.0009, %v843_v6  ;;  %v848_v15 = vmul.f32 %v844_v19, %v836_v20 }
  0xae   :  { %v849_v29 = vmul.f32 %v845_v10, %v837_v9  ;;  %v850_v8 = vmul.f32 %v846_v34, %v838_v27 }
  0xaf   :  { %v851_v49 = vmul.f32 %v847_v31, %v839_v36 }
  0xb5   :  { %v1032_v1 = vpop.eup %1031 }
  0xb6   :  { %v1034_v14 = vpop.eup %1033  ;;  %v865_v5 = vmul.f32 %v1032_v1, %v848_v15 }
  0xb7   :  { %v1036_v50 = vpop.eup %1035  ;;  %v867_v32 = vmul.f32 %v1034_v14, %v849_v29 }
  0xb8   :  { %v1038_v61 = vpop.eup %1037  ;;  %v869_v62 = vmul.f32 %v1036_v50, %v850_v8 }
  0xb9   :  { %v871_v7 = vmul.f32 %v1038_v61, %v851_v49  ;;  %v872_v59 = vadd.f32 %v867_v32, %v865_v5 }
  0xbb   :  { %v873_v38 = vadd.f32 %v872_v59, %v869_v62 }
  0xbd   :  { %v874_v4 = vadd.f32 %v873_v38, %v871_v7 }
  0xbf   :  { %876 = vst [vmem:[%s1560_s2] sm:$0xff] %v874_v4 }

</bundles_post_ra>
